<compile_context>
chip_gen: v5e
topology: v5e:2x2
jax: 0.10.0
libtpu: 0.0.40
codegen_flags: <defaults>
</compile_context>

<pallas_src>
import functools

import jax
import jax.numpy as jnp
from jax.experimental import pallas as pl
from jax.experimental.pallas import tpu as pltpu


def mlp_kernel(x_ref, w1_ref, b1_ref, w2_ref, b2_ref, g_ref, probs_ref):
    """Forward pass for one tile of folded batch rows.

    x_ref:     (TB, F*I)       folded input tile
    w1_ref:    (F*I, F*H)      block-diagonal first linear weight (resident)
    b1_ref:    (1, F*H)        tiled first bias (resident)
    w2_ref:    (F*H, F*IO)     block-diagonal second linear weight (resident)
    b2_ref:    (1, F*IO)       tiled second bias (resident)
    g_ref:     (F*IO, F*IO)    0/1 softmax-group matrix (resident)
    probs_ref: (TB, F*IO)      lane-dense grouped-softmax output
    """
    x = x_ref[...]

    # fc[0]: Linear + ReLU
    h = jnp.dot(x, w1_ref[...], preferred_element_type=jnp.float32) + b1_ref[...]
    h = jnp.maximum(h, 0.0)

    # fc[2]: Linear -> logits, kept in the 2D (TB, F*IO) lane layout.
    logits = jnp.dot(h, w2_ref[...], preferred_element_type=jnp.float32) + b2_ref[...]

    # Grouped softmax without any relayout:
    #  - row-wide max is a constant shift within every group of O lanes, so the softmax
    #    value is unchanged and exp arguments are <= 0 (safe for this MLP's logit range);
    #  - the grouped sum and its broadcast back to every lane is a single MXU matmul
    #    against the constant 0/1 block matrix G;
    #  - exact divide so every group sums to 1 (the approx EUP reciprocal caused the
    #    previous sum-to-1 failure; the divide is off the critical path here).
    m = jnp.max(logits, axis=-1, keepdims=True)
    e = jnp.exp(logits - m)
    denom = jnp.dot(e, g_ref[...], preferred_element_type=jnp.float32)
    probs_ref[...] = (e / denom).astype(probs_ref.dtype)


@functools.partial(
    jax.jit,
    static_argnames=("num_inputs", "num_outputs", "fold", "block_b", "out_dtype"),
)
def mlp_forward(x, w1, b1, w2, b2, *, num_inputs, num_outputs,
                fold=16, block_b=2048, out_dtype=jnp.float32):
    """Returns Categorical probs of shape (batch, num_inputs, num_outputs)."""
    B = x.shape[0]
    I, O = num_inputs, num_outputs
    IO = I * O
    H = w1.shape[1]
    F = fold

    # ---- Batch fold: F rows -> lanes so every operand is lane-dense --------------------
    B_f = pl.cdiv(B, F)          # folded rows
    B_pad = B_f * F
    if B_pad != B:               # pads at most F-1 rows, only when B % F != 0
        x = jnp.pad(x, ((0, B_pad - B), (0, 0)))
    x_f = x.reshape(B_f, F * I)  # free row-major reshape

    # Block-diagonal weights + tiled biases (tiny; fold once outside jit in production).
    eye_f = jnp.eye(F, dtype=w1.dtype)
    w1_bd = jnp.kron(eye_f, w1)          # (F*I, F*H)
    w2_bd = jnp.kron(eye_f, w2)          # (F*H, F*IO)
    b1_t = jnp.tile(b1, (1, F))          # (1, F*H)
    b2_t = jnp.tile(b2, (1, F))          # (1, F*IO)

    # Constant 0/1 group matrix: G[j, k] = 1 iff lanes j, k belong to the same group of O.
    lane = jnp.arange(F * IO)
    g = (lane[:, None] // O == lane[None, :] // O).astype(jnp.float32)   # (F*IO, F*IO)

    # ---- Batch tiling over folded rows --------------------------------------------------
    # Big batches: large tiles (default 2048 folded rows ~= 1 MiB x-tile + 4 MiB out-tile,
    # well under every generation's VMEM limit even double-buffered + resident weights).
    # Small batches: still aim for >= 2 blocks so both v7x TensorCores get work.
    if B_f > block_b:
        tb = block_b                       # multiple of 8 (f32 sublanes)
    elif B_f >= 16:
        half = -(-B_f // 2)                # ceil(B_f / 2)
        tb = -(-half // 8) * 8             # round up to a sublane multiple -> 2 blocks
    else:
        tb = B_f                           # single block equal to the full (tiny) extent
    grid = (pl.cdiv(B_f, tb),)             # ragged last block handled by Pallas

    cost = pl.CostEstimate(
        flops=int(2 * B_f * ((F * I) * (F * H) + (F * H) * (F * IO) + (F * IO) * (F * IO))),
        transcendentals=int(B_f * F * IO),
        bytes_accessed=int(4 * (B_f * F * I + (F * I) * (F * H) + F * H
                                + (F * H) * (F * IO) + F * IO
                                + (F * IO) * (F * IO) + B_f * F * IO)),
    )

    probs_f = pl.pallas_call(
        mlp_kernel,
        out_shape=jax.ShapeDtypeStruct((B_f, F * IO), out_dtype),
        grid=grid,
        in_specs=[
            pl.BlockSpec((tb, F * I), lambda i: (i, 0)),       # x: tiled over folded batch
            pl.BlockSpec((F * I, F * H), lambda i: (0, 0)),    # w1_bd: VMEM resident
            pl.BlockSpec((1, F * H), lambda i: (0, 0)),        # b1:    VMEM resident
            pl.BlockSpec((F * H, F * IO), lambda i: (0, 0)),   # w2_bd: VMEM resident
            pl.BlockSpec((1, F * IO), lambda i: (0, 0)),       # b2:    VMEM resident
            pl.BlockSpec((F * IO, F * IO), lambda i: (0, 0)),  # G:     VMEM resident
        ],
        out_specs=pl.BlockSpec((tb, F * IO), lambda i: (i, 0)),
        compiler_params=pltpu.CompilerParams(dimension_semantics=("parallel",)),
        cost_estimate=cost,
    )(x_f, w1_bd, b1_t, w2_bd, b2_t, g)

    # Free layout plumbing in XLA: unfold rows, strip padding, expose the (B, I, O) view.
    probs2d = probs_f.reshape(B_pad, IO)
    if B_pad != B:
        probs2d = probs2d[:B]
    return probs2d.reshape(B, I, O)


def init_params(key, num_inputs, num_outputs, hidden_size):
    """Deterministic init matching torch.nn.Linear's default (uniform +/- 1/sqrt(fan_in))."""
    k1, k2, k3, k4 = jax.random.split(key, 4)
    bound1 = 1.0 / jnp.sqrt(num_inputs)
    bound2 = 1.0 / jnp.sqrt(hidden_size)
    w1 = jax.random.uniform(k1, (num_inputs, hidden_size), jnp.float32, -bound1, bound1)
    b1 = jax.random.uniform(k2, (1, hidden_size), jnp.float32, -bound1, bound1)
    w2 = jax.random.uniform(
        k3, (hidden_size, num_outputs * num_inputs), jnp.float32, -bound2, bound2
    )
    b2 = jax.random.uniform(
        k4, (1, num_outputs * num_inputs), jnp.float32, -bound2, bound2
    )
    return w1, b1, w2, b2


if __name__ == "__main__":
    num_inputs = 8
    num_outputs = 4
    hidden_size = 32

    key = jax.random.PRNGKey(0)
    kx, kp, kx2 = jax.random.split(key, 3)
    w1, b1, w2, b2 = init_params(kp, num_inputs, num_outputs, hidden_size)

    def reference(x):
        h = jnp.maximum(x @ w1 + b1, 0.0)
        logits = (h @ w2 + b2).reshape(x.shape[0], num_inputs, num_outputs)
        return jax.nn.softmax(logits, axis=-1)

    # Tolerances: exact-f32 paths give ~1e-6 agreement; the looser bounds below also cover
    # worst-case MXU pass rounding of f32 matmuls on real hardware.
    SUM_ATOL = 5e-3
    REF_ATOL = 1e-2

    # Small batch: single (1, 512) folded block.
    x_small = jax.random.normal(kx, (2, num_inputs), jnp.float32)
    probs_small = jax.block_until_ready(
        mlp_forward(x_small, w1, b1, w2, b2,
                    num_inputs=num_inputs, num_outputs=num_outputs))
    assert probs_small.shape == (2, num_inputs, num_outputs)
    assert jnp.allclose(jnp.sum(probs_small, axis=-1), 1.0, atol=SUM_ATOL)
    assert jnp.allclose(probs_small, reference(x_small), atol=REF_ATOL)

    # Larger batch: exercises the fold pad (1000 -> 1008), 2-block grid, resident weights,
    # and the ragged last block.
    x_big = jax.random.normal(kx2, (1000, num_inputs), jnp.float32)
    probs_big = jax.block_until_ready(
        mlp_forward(x_big, w1, b1, w2, b2,
                    num_inputs=num_inputs, num_outputs=num_outputs))
    assert probs_big.shape == (1000, num_inputs, num_outputs)
    assert jnp.allclose(jnp.sum(probs_big, axis=-1), 1.0, atol=SUM_ATOL)
    assert jnp.allclose(probs_big, reference(x_big), atol=REF_ATOL)

    # TODO(synk): torch.distributions.Categorical itself has no Pallas equivalent;
    # we return the probability tensor that fully parameterizes the distribution.
    print("KERNEL_OK")
</pallas_src>

<mosaic_0001>
module attributes {stable_mosaic.version = 11 : i64} {
  func.func @mlp_kernel(%arg0: i32, %arg1: memref<1x128xf32, #tpu.memory_space<vmem>>, %arg2: memref<128x512xf32, #tpu.memory_space<vmem>>, %arg3: memref<1x512xf32, #tpu.memory_space<vmem>>, %arg4: memref<512x512xf32, #tpu.memory_space<vmem>>, %arg5: memref<1x512xf32, #tpu.memory_space<vmem>>, %arg6: memref<512x512xf32, #tpu.memory_space<vmem>>, %arg7: memref<1x512xf32, #tpu.memory_space<vmem>>) attributes {dimension_semantics = [#tpu.dimension_semantics<parallel>], iteration_bounds = array<i64: 1>, scalar_prefetch = 0 : i64, scratch_operands = 0 : i64, tpu.core_type = #tpu.core_type<tc>, window_params = [{transform_indices = @transform_0, window_bounds = array<i64: 1, 128>}, {pipeline_mode = #tpu.pipeline_mode<synchronous>, transform_indices = @transform_1, window_bounds = array<i64: 128, 512>}, {pipeline_mode = #tpu.pipeline_mode<synchronous>, transform_indices = @transform_2, window_bounds = array<i64: 1, 512>}, {pipeline_mode = #tpu.pipeline_mode<synchronous>, transform_indices = @transform_3, window_bounds = array<i64: 512, 512>}, {pipeline_mode = #tpu.pipeline_mode<synchronous>, transform_indices = @transform_4, window_bounds = array<i64: 1, 512>}, {pipeline_mode = #tpu.pipeline_mode<synchronous>, transform_indices = @transform_5, window_bounds = array<i64: 512, 512>}, {transform_indices = @transform_6, window_bounds = array<i64: 1, 512>}]} {
    %c0 = arith.constant 0 : index
    %c0_0 = arith.constant 0 : index
    %0 = vector.load %arg1[%c0, %c0_0] : memref<1x128xf32, #tpu.memory_space<vmem>>, vector<1x128xf32>
    %c0_1 = arith.constant 0 : index
    %c0_2 = arith.constant 0 : index
    %1 = vector.load %arg2[%c0_1, %c0_2] : memref<128x512xf32, #tpu.memory_space<vmem>>, vector<128x512xf32>
    %cst = arith.constant dense<0.000000e+00> : vector<1x512xf32>
    %2 = tpu.matmul %0, %1, %cst {dimension_numbers = #tpu.dot_dimension_numbers<[1], [0], [0], [1], [0, 0, 1, 1], [], []>} : vector<1x128xf32>, vector<128x512xf32>, vector<1x512xf32> -> vector<1x512xf32>
    %c0_3 = arith.constant 0 : index
    %c0_4 = arith.constant 0 : index
    %3 = vector.load %arg3[%c0_3, %c0_4] : memref<1x512xf32, #tpu.memory_space<vmem>>, vector<1x512xf32>
    %4 = arith.addf %2, %3 : vector<1x512xf32>
    %cst_5 = arith.constant 0.000000e+00 : f32
    %5 = vector.broadcast %cst_5 : f32 to vector<1x512xf32>
    %6 = arith.maximumf %4, %5 : vector<1x512xf32>
    %c0_6 = arith.constant 0 : index
    %c0_7 = arith.constant 0 : index
    %7 = vector.load %arg4[%c0_6, %c0_7] : memref<512x512xf32, #tpu.memory_space<vmem>>, vector<512x512xf32>
    %cst_8 = arith.constant dense<0.000000e+00> : vector<1x512xf32>
    %8 = tpu.matmul %6, %7, %cst_8 {dimension_numbers = #tpu.dot_dimension_numbers<[1], [0], [0], [1], [0, 0, 1, 1], [], []>} : vector<1x512xf32>, vector<512x512xf32>, vector<1x512xf32> -> vector<1x512xf32>
    %c0_9 = arith.constant 0 : index
    %c0_10 = arith.constant 0 : index
    %9 = vector.load %arg5[%c0_9, %c0_10] : memref<1x512xf32, #tpu.memory_space<vmem>>, vector<1x512xf32>
    %10 = arith.addf %8, %9 : vector<1x512xf32>
    %cst_11 = arith.constant dense<0xFF800000> : vector<1xf32>
    %11 = vector.multi_reduction <maximumf>, %10, %cst_11 [1] : vector<1x512xf32> to vector<1xf32>
    %12 = vector.shape_cast %11 : vector<1xf32> to vector<1x1xf32>
    %13 = vector.broadcast %12 : vector<1x1xf32> to vector<1x512xf32>
    %14 = arith.subf %10, %13 : vector<1x512xf32>
    %15 = math.exp %14 : vector<1x512xf32>
    %c0_12 = arith.constant 0 : index
    %c0_13 = arith.constant 0 : index
    %16 = vector.load %arg6[%c0_12, %c0_13] : memref<512x512xf32, #tpu.memory_space<vmem>>, vector<512x512xf32>
    %cst_14 = arith.constant dense<0.000000e+00> : vector<1x512xf32>
    %17 = tpu.matmul %15, %16, %cst_14 {dimension_numbers = #tpu.dot_dimension_numbers<[1], [0], [0], [1], [0, 0, 1, 1], [], []>} : vector<1x512xf32>, vector<512x512xf32>, vector<1x512xf32> -> vector<1x512xf32>
    %18 = arith.divf %15, %17 : vector<1x512xf32>
    %c0_15 = arith.constant 0 : index
    %c0_16 = arith.constant 0 : index
    %19 = vector.load %arg7[%c0_15, %c0_16] : memref<1x512xf32, #tpu.memory_space<vmem>>, vector<1x512xf32>
    tpu.vector_store %arg7[%c0_15, %c0_16], %18 {strides = array<i32>} : memref<1x512xf32, #tpu.memory_space<vmem>>, vector<1x512xf32>,
    return
  }
  func.func @transform_0(%arg0: i32) -> (i32, i32) {
    %c0_i32 = arith.constant 0 : i32
    %c0_i32_0 = arith.constant 0 : i32
    return %arg0, %c0_i32 : i32, i32
  }
  func.func @transform_1(%arg0: i32) -> (i32, i32) {
    %c0_i32 = arith.constant 0 : i32
    %c0_i32_0 = arith.constant 0 : i32
    %c0_i32_1 = arith.constant 0 : i32
    return %c0_i32, %c0_i32_0 : i32, i32
  }
  func.func @transform_2(%arg0: i32) -> (i32, i32) {
    %c0_i32 = arith.constant 0 : i32
    %c0_i32_0 = arith.constant 0 : i32
    %c0_i32_1 = arith.constant 0 : i32
    return %c0_i32, %c0_i32_0 : i32, i32
  }
  func.func @transform_3(%arg0: i32) -> (i32, i32) {
    %c0_i32 = arith.constant 0 : i32
    %c0_i32_0 = arith.constant 0 : i32
    %c0_i32_1 = arith.constant 0 : i32
    return %c0_i32, %c0_i32_0 : i32, i32
  }
  func.func @transform_4(%arg0: i32) -> (i32, i32) {
    %c0_i32 = arith.constant 0 : i32
    %c0_i32_0 = arith.constant 0 : i32
    %c0_i32_1 = arith.constant 0 : i32
    return %c0_i32, %c0_i32_0 : i32, i32
  }
  func.func @transform_5(%arg0: i32) -> (i32, i32) {
    %c0_i32 = arith.constant 0 : i32
    %c0_i32_0 = arith.constant 0 : i32
    %c0_i32_1 = arith.constant 0 : i32
    return %c0_i32, %c0_i32_0 : i32, i32
  }
  func.func @transform_6(%arg0: i32) -> (i32, i32) {
    %c0_i32 = arith.constant 0 : i32
    %c0_i32_0 = arith.constant 0 : i32
    return %arg0, %c0_i32 : i32, i32
  }
}

</mosaic_0001>

<bundles_post_ra>
// kernel: mlp_forward.1
= control target key start
LH: loop header
LB: loop body
LE: loop exit
PB: predicated region body
PF: predicated region fallthrough
CT: control target
= control target key end

     0   :  { %vm768_vm0 = vcmask 1040384   ;;  %s3346_s1 = inlined_call_operand.vmem [shape: f32[128,512], index: 1, kind: input, shape index: {}]   ;;  %s3347_s0 = inlined_call_operand.vmem [shape: f32[1,128], index: 0, kind: input, shape index: {}]   ;;  %s3348_s3 = inlined_call_operand.vmem [shape: f32[512,512], index: 3, kind: input, shape index: {}]   ;;  %s3349_s2 = inlined_call_operand.vmem [shape: f32[1,512], index: 2, kind: input, shape index: {}]   ;;  %s3350_s5 = inlined_call_operand.vmem [shape: f32[512,512], index: 5, kind: input, shape index: {}]   ;;  %s3351_s4 = inlined_call_operand.vmem [shape: f32[1,512], index: 4, kind: input, shape index: {}]   ;;  %s3352_s6 = inlined_call_operand.vmem [shape: f32[1,512], index: 6, kind: output, shape index: {}]  }
   0x1   :  { %v84_v0 = vld [vmem:[%s3346_s1 + $0x1e0] sm:$0xff]  ;;  %v85_v1 = vld [vmem:[%s3346_s1 + $0x1e8] sm:$0xff]  ;;  %v86_v2 = vld [vmem:[%s3346_s1 + $0x1f0] sm:$0xff] }
   0x2   :  { %98 = vmatpush.msra.mxu0 %v84_v0  ;;  %118 = vmatpush.msra.mxu1 %v85_v1  ;;  %v87_v3 = vld [vmem:[%s3346_s1 + $0x1f8] sm:$0xff]  ;;  %v80_v4 = vld [vmem:[%s3346_s1 + $0x1c0] sm:$0xff]  ;;  %v81_v5 = vld [vmem:[%s3346_s1 + $0x1c8] sm:$0xff] }
   0x3   :  { %138 = vmatpush.msra.mxu2 %v86_v2  ;;  %158 = vmatpush.msra.mxu3 %v87_v3  ;;  %v82_v6 = vld [vmem:[%s3346_s1 + $0x1d0] sm:$0xff]  ;;  %v83_v7 = vld [vmem:[%s3346_s1 + $0x1d8] sm:$0xff]  ;;  %v76_v8 = vld [vmem:[%s3346_s1 + $0x1a0] sm:$0xff] }
   0x4   :  { %99 = vmatpush.msra.mxu0 %v80_v4  ;;  %119 = vmatpush.msra.mxu1 %v81_v5  ;;  %v77_v9 = vld [vmem:[%s3346_s1 + $0x1a8] sm:$0xff]  ;;  %v78_v10 = vld [vmem:[%s3346_s1 + $0x1b0] sm:$0xff]  ;;  %v79_v11 = vld [vmem:[%s3346_s1 + $0x1b8] sm:$0xff] }
   0x5   :  { %139 = vmatpush.msra.mxu2 %v82_v6  ;;  %159 = vmatpush.msra.mxu3 %v83_v7  ;;  %v72_v12 = vld [vmem:[%s3346_s1 + $0x180] sm:$0xff]  ;;  %v73_v13 = vld [vmem:[%s3346_s1 + $0x188] sm:$0xff]  ;;  %v74_v14 = vld [vmem:[%s3346_s1 + $0x190] sm:$0xff] }
   0x6   :  { %100 = vmatpush.msra.mxu0 %v76_v8  ;;  %120 = vmatpush.msra.mxu1 %v77_v9  ;;  %v75_v15 = vld [vmem:[%s3346_s1 + $0x198] sm:$0xff]  ;;  %v68_v16 = vld [vmem:[%s3346_s1 + $0x160] sm:$0xff]  ;;  %v69_v17 = vld [vmem:[%s3346_s1 + $0x168] sm:$0xff] }
   0x7   :  { %140 = vmatpush.msra.mxu2 %v78_v10  ;;  %160 = vmatpush.msra.mxu3 %v79_v11  ;;  %v70_v18 = vld [vmem:[%s3346_s1 + $0x170] sm:$0xff]  ;;  %v71_v19 = vld [vmem:[%s3346_s1 + $0x178] sm:$0xff]  ;;  %v64_v20 = vld [vmem:[%s3346_s1 + $0x140] sm:$0xff] }
   0x8   :  { %101 = vmatpush.msra.mxu0 %v72_v12  ;;  %121 = vmatpush.msra.mxu1 %v73_v13  ;;  %v65_v21 = vld [vmem:[%s3346_s1 + $0x148] sm:$0xff]  ;;  %v66_v22 = vld [vmem:[%s3346_s1 + $0x150] sm:$0xff]  ;;  %v67_v23 = vld [vmem:[%s3346_s1 + $0x158] sm:$0xff] }
   0x9   :  { %141 = vmatpush.msra.mxu2 %v74_v14  ;;  %161 = vmatpush.msra.mxu3 %v75_v15  ;;  %v60_v24 = vld [vmem:[%s3346_s1 + $0x120] sm:$0xff]  ;;  %v61_v25 = vld [vmem:[%s3346_s1 + $0x128] sm:$0xff]  ;;  %v62_v26 = vld [vmem:[%s3346_s1 + $0x130] sm:$0xff] }
   0xa   :  { %102 = vmatpush.msra.mxu0 %v68_v16  ;;  %122 = vmatpush.msra.mxu1 %v69_v17  ;;  %v63_v27 = vld [vmem:[%s3346_s1 + $0x138] sm:$0xff]  ;;  %v56_v28 = vld [vmem:[%s3346_s1 + $0x100] sm:$0xff]  ;;  %v57_v29 = vld [vmem:[%s3346_s1 + $0x108] sm:$0xff] }
   0xb   :  { %142 = vmatpush.msra.mxu2 %v70_v18  ;;  %162 = vmatpush.msra.mxu3 %v71_v19  ;;  %v58_v30 = vld [vmem:[%s3346_s1 + $0x110] sm:$0xff]  ;;  %v59_v31 = vld [vmem:[%s3346_s1 + $0x118] sm:$0xff]  ;;  %v52_v32 = vld [vmem:[%s3346_s1 + $0xe0] sm:$0xff] }
   0xc   :  { %103 = vmatpush.msra.mxu0 %v64_v20  ;;  %123 = vmatpush.msra.mxu1 %v65_v21  ;;  %v53_v33 = vld [vmem:[%s3346_s1 + $0xe8] sm:$0xff]  ;;  %v54_v34 = vld [vmem:[%s3346_s1 + $0xf0] sm:$0xff]  ;;  %v55_v35 = vld [vmem:[%s3346_s1 + $0xf8] sm:$0xff] }
   0xd   :  { %143 = vmatpush.msra.mxu2 %v66_v22  ;;  %163 = vmatpush.msra.mxu3 %v67_v23  ;;  %v48_v36 = vld [vmem:[%s3346_s1 + $0xc0] sm:$0xff]  ;;  %v49_v37 = vld [vmem:[%s3346_s1 + $0xc8] sm:$0xff]  ;;  %v50_v38 = vld [vmem:[%s3346_s1 + $0xd0] sm:$0xff] }
   0xe   :  { %104 = vmatpush.msra.mxu0 %v60_v24  ;;  %124 = vmatpush.msra.mxu1 %v61_v25  ;;  %v51_v39 = vld [vmem:[%s3346_s1 + $0xd8] sm:$0xff]  ;;  %v44_v40 = vld [vmem:[%s3346_s1 + $0xa0] sm:$0xff]  ;;  %v45_v41 = vld [vmem:[%s3346_s1 + $0xa8] sm:$0xff] }
   0xf   :  { %144 = vmatpush.msra.mxu2 %v62_v26  ;;  %164 = vmatpush.msra.mxu3 %v63_v27  ;;  %v46_v42 = vld [vmem:[%s3346_s1 + $0xb0] sm:$0xff]  ;;  %v47_v43 = vld [vmem:[%s3346_s1 + $0xb8] sm:$0xff]  ;;  %v40_v44 = vld [vmem:[%s3346_s1 + $0x80] sm:$0xff] }
  0x10   :  { %105 = vmatpush.msra.mxu0 %v56_v28  ;;  %125 = vmatpush.msra.mxu1 %v57_v29  ;;  %v41_v45 = vld [vmem:[%s3346_s1 + $0x88] sm:$0xff]  ;;  %v42_v46 = vld [vmem:[%s3346_s1 + $0x90] sm:$0xff]  ;;  %v43_v47 = vld [vmem:[%s3346_s1 + $0x98] sm:$0xff] }
  0x11   :  { %145 = vmatpush.msra.mxu2 %v58_v30  ;;  %165 = vmatpush.msra.mxu3 %v59_v31  ;;  %v36_v48 = vld [vmem:[%s3346_s1 + $0x60] sm:$0xff]  ;;  %v37_v49 = vld [vmem:[%s3346_s1 + $0x68] sm:$0xff]  ;;  %v38_v50 = vld [vmem:[%s3346_s1 + $0x70] sm:$0xff] }
  0x12   :  { %106 = vmatpush.msra.mxu0 %v52_v32  ;;  %126 = vmatpush.msra.mxu1 %v53_v33  ;;  %v39_v51 = vld [vmem:[%s3346_s1 + $0x78] sm:$0xff]  ;;  %v32_v52 = vld [vmem:[%s3346_s1 + $0x40] sm:$0xff]  ;;  %v33_v53 = vld [vmem:[%s3346_s1 + $0x48] sm:$0xff] }
  0x13   :  { %146 = vmatpush.msra.mxu2 %v54_v34  ;;  %166 = vmatpush.msra.mxu3 %v55_v35  ;;  %v34_v54 = vld [vmem:[%s3346_s1 + $0x50] sm:$0xff]  ;;  %v35_v55 = vld [vmem:[%s3346_s1 + $0x58] sm:$0xff]  ;;  %v28_v56 = vld [vmem:[%s3346_s1 + $0x20] sm:$0xff] }
  0x14   :  { %107 = vmatpush.msra.mxu0 %v48_v36  ;;  %127 = vmatpush.msra.mxu1 %v49_v37  ;;  %v29_v57 = vld [vmem:[%s3346_s1 + $0x28] sm:$0xff]  ;;  %v30_v58 = vld [vmem:[%s3346_s1 + $0x30] sm:$0xff]  ;;  %v31_v59 = vld [vmem:[%s3346_s1 + $0x38] sm:$0xff] }
  0x15   :  { %147 = vmatpush.msra.mxu2 %v50_v38  ;;  %167 = vmatpush.msra.mxu3 %v51_v39  ;;  %v24_v60 = vld [vmem:[%s3346_s1] sm:$0xff]  ;;  %v25_v61 = vld [vmem:[%s3346_s1 + $0x8] sm:$0xff]  ;;  %v26_v62 = vld [vmem:[%s3346_s1 + $0x10] sm:$0xff] }
  0x16   :  { %108 = vmatpush.msra.mxu0 %v44_v40  ;;  %128 = vmatpush.msra.mxu1 %v45_v41  ;;  %v27_v63 = vld [vmem:[%s3346_s1 + $0x18] sm:$0xff]  ;;  %v23_v0 = vld [vmem:[%s3347_s0] sm:$0x1] }
  0x17   :  { %148 = vmatpush.msra.mxu2 %v46_v42  ;;  %168 = vmatpush.msra.mxu3 %v47_v43  ;;  %v242_v1 = vld [vmem:[%s3348_s3 + $0x1e0] sm:$0xff] }
  0x18   :  { %109 = vmatpush.msra.mxu0 %v40_v44  ;;  %129 = vmatpush.msra.mxu1 %v41_v45  ;;  %v306_v2 = vld [vmem:[%s3348_s3 + $0x3e0] sm:$0xff] }
  0x19   :  { %149 = vmatpush.msra.mxu2 %v42_v46  ;;  %169 = vmatpush.msra.mxu3 %v43_v47  ;;  %v370_v3 = vld [vmem:[%s3348_s3 + $0x5e0] sm:$0xff] }
  0x1a   :  { %110 = vmatpush.msra.mxu0 %v36_v48  ;;  %130 = vmatpush.msra.mxu1 %v37_v49  ;;  %v434_v4 = vld [vmem:[%s3348_s3 + $0x7e0] sm:$0xff] }
  0x1b   :  { %150 = vmatpush.msra.mxu2 %v38_v50  ;;  %170 = vmatpush.msra.mxu3 %v39_v51  ;;  %v238_v5 = vld [vmem:[%s3348_s3 + $0x1c0] sm:$0xff] }
  0x1c   :  { %111 = vmatpush.msra.mxu0 %v32_v52  ;;  %131 = vmatpush.msra.mxu1 %v33_v53  ;;  %v302_v6 = vld [vmem:[%s3348_s3 + $0x3c0] sm:$0xff] }
  0x1d   :  { %151 = vmatpush.msra.mxu2 %v34_v54  ;;  %171 = vmatpush.msra.mxu3 %v35_v55  ;;  %v366_v7 = vld [vmem:[%s3348_s3 + $0x5c0] sm:$0xff] }
  0x1e   :  { %112 = vmatpush.msra.mxu0 %v28_v56  ;;  %132 = vmatpush.msra.mxu1 %v29_v57  ;;  %v430_v8 = vld [vmem:[%s3348_s3 + $0x7c0] sm:$0xff] }
  0x1f   :  { %152 = vmatpush.msra.mxu2 %v30_v58  ;;  %172 = vmatpush.msra.mxu3 %v31_v59  ;;  %v234_v9 = vld [vmem:[%s3348_s3 + $0x1a0] sm:$0xff] }
  0x20   :  { %113 = vmatpush.msra.mxu0 %v24_v60  ;;  %133 = vmatpush.msra.mxu1 %v25_v61  ;;  %v298_v10 = vld [vmem:[%s3348_s3 + $0x3a0] sm:$0xff] }
  0x21   :  { %153 = vmatpush.msra.mxu2 %v26_v62  ;;  %173 = vmatpush.msra.mxu3 %v27_v63  ;;  %v362_v11 = vld [vmem:[%s3348_s3 + $0x5a0] sm:$0xff]  ;;  %v243_v63 = vld [vmem:[%s3348_s3 + $0x1e8] sm:$0xff] }
  0x22   :  { %114 = vmatmul.f32.vlgmr.msra.gmra.mxu0 %v23_v0  ;;  %134 = vmatmul.f32.vlgmr.msra.gmra.mxu1 %v23_v0  ;;  %v426_v12 = vld [vmem:[%s3348_s3 + $0x7a0] sm:$0xff] }
  0x23   :  { %154 = vmatmul.f32.vlgmr.msra.gmra.mxu2 %v23_v0  ;;  %174 = vmatmul.f32.vlgmr.msra.gmra.mxu3 %v23_v0  ;;  %v230_v13 = vld [vmem:[%s3348_s3 + $0x180] sm:$0xff]  ;;  %v307_v0 = vld [vmem:[%s3348_s3 + $0x3e8] sm:$0xff] }
  0x24   :  { %448 = vmatpush.msrb.mxu0 %v242_v1  ;;  %468 = vmatpush.msrb.mxu1 %v306_v2  ;;  %v294_v14 = vld [vmem:[%s3348_s3 + $0x380] sm:$0xff] }
  0x25   :  { %488 = vmatpush.msrb.mxu2 %v370_v3  ;;  %508 = vmatpush.msrb.mxu3 %v434_v4  ;;  %v358_v15 = vld [vmem:[%s3348_s3 + $0x580] sm:$0xff]  ;;  %v239_v3 = vld [vmem:[%s3348_s3 + $0x1c8] sm:$0xff] }
  0x26   :  { %449 = vmatpush.msrb.mxu0 %v238_v5  ;;  %469 = vmatpush.msrb.mxu1 %v302_v6  ;;  %v422_v16 = vld [vmem:[%s3348_s3 + $0x780] sm:$0xff]  ;;  %v303_v4 = vld [vmem:[%s3348_s3 + $0x3c8] sm:$0xff] }
  0x27   :  { %489 = vmatpush.msrb.mxu2 %v366_v7  ;;  %509 = vmatpush.msrb.mxu3 %v430_v8  ;;  %v226_v17 = vld [vmem:[%s3348_s3 + $0x160] sm:$0xff]  ;;  %v371_v5 = vld [vmem:[%s3348_s3 + $0x5e8] sm:$0xff] }
  0x28   :  { %450 = vmatpush.msrb.mxu0 %v234_v9  ;;  %470 = vmatpush.msrb.mxu1 %v298_v10  ;;  %v290_v18 = vld [vmem:[%s3348_s3 + $0x360] sm:$0xff]  ;;  %v435_v6 = vld [vmem:[%s3348_s3 + $0x7e8] sm:$0xff] }
  0x29   :  { %490 = vmatpush.msrb.mxu2 %v362_v11  ;;  %510 = vmatpush.msrb.mxu3 %v426_v12  ;;  %v354_v19 = vld [vmem:[%s3348_s3 + $0x560] sm:$0xff]  ;;  %v235_v7 = vld [vmem:[%s3348_s3 + $0x1a8] sm:$0xff] }
  0x2a   :  { %451 = vmatpush.msrb.mxu0 %v230_v13  ;;  %471 = vmatpush.msrb.mxu1 %v294_v14  ;;  %v418_v20 = vld [vmem:[%s3348_s3 + $0x760] sm:$0xff]  ;;  %v299_v8 = vld [vmem:[%s3348_s3 + $0x3a8] sm:$0xff] }
  0x2b   :  { %v222_v21 = vld [vmem:[%s3348_s3 + $0x140] sm:$0xff]  ;;  %491 = vmatpush.msrb.mxu2 %v358_v15  ;;  %511 = vmatpush.msrb.mxu3 %v422_v16  ;;  %v367_v9 = vld [vmem:[%s3348_s3 + $0x5c8] sm:$0xff] }
  0x2c   :  { %v286_v22 = vld [vmem:[%s3348_s3 + $0x340] sm:$0xff]  ;;  %452 = vmatpush.msrb.mxu0 %v226_v17  ;;  %472 = vmatpush.msrb.mxu1 %v290_v18  ;;  %v431_v10 = vld [vmem:[%s3348_s3 + $0x7c8] sm:$0xff] }
  0x2d   :  { %v350_v23 = vld [vmem:[%s3348_s3 + $0x540] sm:$0xff]  ;;  %492 = vmatpush.msrb.mxu2 %v354_v19  ;;  %512 = vmatpush.msrb.mxu3 %v418_v20  ;;  %v231_v11 = vld [vmem:[%s3348_s3 + $0x188] sm:$0xff] }
  0x2e   :  { %v414_v24 = vld [vmem:[%s3348_s3 + $0x740] sm:$0xff]  ;;  %453 = vmatpush.msrb.mxu0 %v222_v21  ;;  %473 = vmatpush.msrb.mxu1 %v286_v22  ;;  %v295_v12 = vld [vmem:[%s3348_s3 + $0x388] sm:$0xff] }
  0x2f   :  { %v218_v25 = vld [vmem:[%s3348_s3 + $0x120] sm:$0xff]  ;;  %493 = vmatpush.msrb.mxu2 %v350_v23  ;;  %513 = vmatpush.msrb.mxu3 %v414_v24  ;;  %v363_v13 = vld [vmem:[%s3348_s3 + $0x5a8] sm:$0xff] }
  0x30   :  { %v282_v26 = vld [vmem:[%s3348_s3 + $0x320] sm:$0xff]  ;;  %454 = vmatpush.msrb.mxu0 %v218_v25  ;;  %v427_v14 = vld [vmem:[%s3348_s3 + $0x7a8] sm:$0xff] }
  0x31   :  { %v346_v27 = vld [vmem:[%s3348_s3 + $0x520] sm:$0xff]  ;;  %474 = vmatpush.msrb.mxu1 %v282_v26  ;;  %v227_v15 = vld [vmem:[%s3348_s3 + $0x168] sm:$0xff] }
  0x32   :  { %v410_v28 = vld [vmem:[%s3348_s3 + $0x720] sm:$0xff]  ;;  %494 = vmatpush.msrb.mxu2 %v346_v27  ;;  %v291_v16 = vld [vmem:[%s3348_s3 + $0x368] sm:$0xff] }
  0x33   :  { %v214_v29 = vld [vmem:[%s3348_s3 + $0x100] sm:$0xff]  ;;  %514 = vmatpush.msrb.mxu3 %v410_v28  ;;  %v359_v17 = vld [vmem:[%s3348_s3 + $0x588] sm:$0xff] }
  0x34   :  { %v278_v30 = vld [vmem:[%s3348_s3 + $0x300] sm:$0xff]  ;;  %455 = vmatpush.msrb.mxu0 %v214_v29  ;;  %v423_v18 = vld [vmem:[%s3348_s3 + $0x788] sm:$0xff] }
  0x35   :  { %v342_v31 = vld [vmem:[%s3348_s3 + $0x500] sm:$0xff]  ;;  %475 = vmatpush.msrb.mxu1 %v278_v30  ;;  %v223_v19 = vld [vmem:[%s3348_s3 + $0x148] sm:$0xff] }
  0x36   :  { %v406_v32 = vld [vmem:[%s3348_s3 + $0x700] sm:$0xff]  ;;  %495 = vmatpush.msrb.mxu2 %v342_v31  ;;  %v287_v20 = vld [vmem:[%s3348_s3 + $0x348] sm:$0xff] }
  0x37   :  { %v210_v33 = vld [vmem:[%s3348_s3 + $0xe0] sm:$0xff]  ;;  %515 = vmatpush.msrb.mxu3 %v406_v32  ;;  %v355_v21 = vld [vmem:[%s3348_s3 + $0x568] sm:$0xff] }
  0x38   :  { %v274_v34 = vld [vmem:[%s3348_s3 + $0x2e0] sm:$0xff]  ;;  %456 = vmatpush.msrb.mxu0 %v210_v33  ;;  %v419_v22 = vld [vmem:[%s3348_s3 + $0x768] sm:$0xff] }
  0x39   :  { %v338_v35 = vld [vmem:[%s3348_s3 + $0x4e0] sm:$0xff]  ;;  %476 = vmatpush.msrb.mxu1 %v274_v34  ;;  %v219_v23 = vld [vmem:[%s3348_s3 + $0x128] sm:$0xff] }
  0x3a   :  { %v402_v36 = vld [vmem:[%s3348_s3 + $0x6e0] sm:$0xff]  ;;  %496 = vmatpush.msrb.mxu2 %v338_v35  ;;  %v283_v24 = vld [vmem:[%s3348_s3 + $0x328] sm:$0xff] }
  0x3b   :  { %v206_v37 = vld [vmem:[%s3348_s3 + $0xc0] sm:$0xff]  ;;  %516 = vmatpush.msrb.mxu3 %v402_v36  ;;  %v351_v25 = vld [vmem:[%s3348_s3 + $0x548] sm:$0xff] }
  0x3c   :  { %v270_v38 = vld [vmem:[%s3348_s3 + $0x2c0] sm:$0xff]  ;;  %457 = vmatpush.msrb.mxu0 %v206_v37  ;;  %v415_v26 = vld [vmem:[%s3348_s3 + $0x748] sm:$0xff] }
  0x3d   :  { %v334_v39 = vld [vmem:[%s3348_s3 + $0x4c0] sm:$0xff]  ;;  %477 = vmatpush.msrb.mxu1 %v270_v38  ;;  %v215_v27 = vld [vmem:[%s3348_s3 + $0x108] sm:$0xff] }
  0x3e   :  { %v398_v40 = vld [vmem:[%s3348_s3 + $0x6c0] sm:$0xff]  ;;  %497 = vmatpush.msrb.mxu2 %v334_v39  ;;  %v279_v28 = vld [vmem:[%s3348_s3 + $0x308] sm:$0xff] }
  0x3f   :  { %v202_v41 = vld [vmem:[%s3348_s3 + $0xa0] sm:$0xff]  ;;  %517 = vmatpush.msrb.mxu3 %v398_v40  ;;  %v347_v29 = vld [vmem:[%s3348_s3 + $0x528] sm:$0xff] }
  0x40   :  { %v266_v42 = vld [vmem:[%s3348_s3 + $0x2a0] sm:$0xff]  ;;  %458 = vmatpush.msrb.mxu0 %v202_v41  ;;  %v411_v30 = vld [vmem:[%s3348_s3 + $0x728] sm:$0xff] }
  0x41   :  { %v330_v43 = vld [vmem:[%s3348_s3 + $0x4a0] sm:$0xff]  ;;  %478 = vmatpush.msrb.mxu1 %v266_v42  ;;  %v211_v31 = vld [vmem:[%s3348_s3 + $0xe8] sm:$0xff] }
  0x42   :  { %v394_v44 = vld [vmem:[%s3348_s3 + $0x6a0] sm:$0xff]  ;;  %498 = vmatpush.msrb.mxu2 %v330_v43  ;;  %v275_v32 = vld [vmem:[%s3348_s3 + $0x2e8] sm:$0xff] }
  0x43   :  { %v198_v45 = vld [vmem:[%s3348_s3 + $0x80] sm:$0xff]  ;;  %518 = vmatpush.msrb.mxu3 %v394_v44  ;;  %v343_v33 = vld [vmem:[%s3348_s3 + $0x508] sm:$0xff] }
  0x44   :  { %v262_v46 = vld [vmem:[%s3348_s3 + $0x280] sm:$0xff]  ;;  %459 = vmatpush.msrb.mxu0 %v198_v45  ;;  %v407_v34 = vld [vmem:[%s3348_s3 + $0x708] sm:$0xff] }
  0x45   :  { %v326_v47 = vld [vmem:[%s3348_s3 + $0x480] sm:$0xff]  ;;  %479 = vmatpush.msrb.mxu1 %v262_v46  ;;  %v207_v35 = vld [vmem:[%s3348_s3 + $0xc8] sm:$0xff] }
  0x46   :  { %v390_v48 = vld [vmem:[%s3348_s3 + $0x680] sm:$0xff]  ;;  %499 = vmatpush.msrb.mxu2 %v326_v47  ;;  %v271_v36 = vld [vmem:[%s3348_s3 + $0x2c8] sm:$0xff] }
  0x47   :  { %v194_v49 = vld [vmem:[%s3348_s3 + $0x60] sm:$0xff]  ;;  %519 = vmatpush.msrb.mxu3 %v390_v48  ;;  %v339_v37 = vld [vmem:[%s3348_s3 + $0x4e8] sm:$0xff] }
  0x48   :  { %v258_v50 = vld [vmem:[%s3348_s3 + $0x260] sm:$0xff]  ;;  %460 = vmatpush.msrb.mxu0 %v194_v49  ;;  %v403_v38 = vld [vmem:[%s3348_s3 + $0x6e8] sm:$0xff] }
  0x49   :  { %v322_v51 = vld [vmem:[%s3348_s3 + $0x460] sm:$0xff]  ;;  %480 = vmatpush.msrb.mxu1 %v258_v50  ;;  %v203_v39 = vld [vmem:[%s3348_s3 + $0xa8] sm:$0xff] }
  0x4a   :  { %v386_v52 = vld [vmem:[%s3348_s3 + $0x660] sm:$0xff]  ;;  %500 = vmatpush.msrb.mxu2 %v322_v51  ;;  %v267_v40 = vld [vmem:[%s3348_s3 + $0x2a8] sm:$0xff] }
  0x4b   :  { %v190_v53 = vld [vmem:[%s3348_s3 + $0x40] sm:$0xff]  ;;  %520 = vmatpush.msrb.mxu3 %v386_v52  ;;  %v335_v41 = vld [vmem:[%s3348_s3 + $0x4c8] sm:$0xff] }
  0x4c   :  { %v254_v54 = vld [vmem:[%s3348_s3 + $0x240] sm:$0xff]  ;;  %461 = vmatpush.msrb.mxu0 %v190_v53  ;;  %v399_v42 = vld [vmem:[%s3348_s3 + $0x6c8] sm:$0xff] }
  0x4d   :  { %v318_v55 = vld [vmem:[%s3348_s3 + $0x440] sm:$0xff]  ;;  %481 = vmatpush.msrb.mxu1 %v254_v54  ;;  %v199_v43 = vld [vmem:[%s3348_s3 + $0x88] sm:$0xff] }
  0x4e   :  { %v382_v56 = vld [vmem:[%s3348_s3 + $0x640] sm:$0xff]  ;;  %501 = vmatpush.msrb.mxu2 %v318_v55  ;;  %v263_v44 = vld [vmem:[%s3348_s3 + $0x288] sm:$0xff] }
  0x4f   :  { %v186_v57 = vld [vmem:[%s3348_s3 + $0x20] sm:$0xff]  ;;  %521 = vmatpush.msrb.mxu3 %v382_v56  ;;  %v195_v45 = vld [vmem:[%s3348_s3 + $0x68] sm:$0xff] }
  0x50   :  { %v250_v58 = vld [vmem:[%s3348_s3 + $0x220] sm:$0xff]  ;;  %462 = vmatpush.msrb.mxu0 %v186_v57  ;;  %v259_v46 = vld [vmem:[%s3348_s3 + $0x268] sm:$0xff] }
  0x51   :  { %v314_v59 = vld [vmem:[%s3348_s3 + $0x420] sm:$0xff]  ;;  %482 = vmatpush.msrb.mxu1 %v250_v58  ;;  %v191_v47 = vld [vmem:[%s3348_s3 + $0x48] sm:$0xff] }
  0x52   :  { %v378_v60 = vld [vmem:[%s3348_s3 + $0x620] sm:$0xff]  ;;  %502 = vmatpush.msrb.mxu2 %v314_v59  ;;  %v255_v48 = vld [vmem:[%s3348_s3 + $0x248] sm:$0xff] }
  0x53   :  { %v182_v61 = vld [vmem:[%s3348_s3] sm:$0xff]  ;;  %522 = vmatpush.msrb.mxu3 %v378_v60  ;;  %v331_v49 = vld [vmem:[%s3348_s3 + $0x4a8] sm:$0xff] }
  0x54   :  { %v246_v62 = vld [vmem:[%s3348_s3 + $0x200] sm:$0xff]  ;;  %463 = vmatpush.msrb.mxu0 %v182_v61  ;;  %v395_v50 = vld [vmem:[%s3348_s3 + $0x6a8] sm:$0xff] }
  0x55   :  { %v310_v1 = vld [vmem:[%s3348_s3 + $0x400] sm:$0xff]  ;;  %483 = vmatpush.msrb.mxu1 %v246_v62  ;;  %v187_v51 = vld [vmem:[%s3348_s3 + $0x28] sm:$0xff] }
  0x56   :  { %v374_v2 = vld [vmem:[%s3348_s3 + $0x600] sm:$0xff]  ;;  %528 = vmatpush.msra.mxu0 %v243_v63  ;;  %503 = vmatpush.msrb.mxu2 %v310_v1  ;;  %v251_v52 = vld [vmem:[%s3348_s3 + $0x228] sm:$0xff] }
  0x57   :  { %548 = vmatpush.msra.mxu1 %v307_v0  ;;  %523 = vmatpush.msrb.mxu3 %v374_v2  ;;  %v327_v53 = vld [vmem:[%s3348_s3 + $0x488] sm:$0xff]  ;;  %v88_v1 = vld [vmem:[%s3349_s2] sm:$0xf] }
  0x58   :  { %529 = vmatpush.msra.mxu0 %v239_v3  ;;  %568 = vmatpush.msra.mxu2 %v371_v5  ;;  %v391_v54 = vld [vmem:[%s3348_s3 + $0x688] sm:$0xff]  ;;  %v90_v2 = vperm.slane %v88_v1, 0  ;;  %v91_v3 = vperm.slane %v88_v1, 1 }
  0x59   :  { %549 = vmatpush.msra.mxu1 %v303_v4  ;;  %588 = vmatpush.msra.mxu3 %v435_v6  ;;  %v183_v55 = vld [vmem:[%s3348_s3 + $0x8] sm:$0xff] }
  0x5a   :  { %530 = vmatpush.msra.mxu0 %v235_v7  ;;  %569 = vmatpush.msra.mxu2 %v367_v9  ;;  %v247_v56 = vld [vmem:[%s3348_s3 + $0x208] sm:$0xff] }
  0x5b   :  { %550 = vmatpush.msra.mxu1 %v299_v8  ;;  %589 = vmatpush.msra.mxu3 %v431_v10  ;;  %v323_v57 = vld [vmem:[%s3348_s3 + $0x468] sm:$0xff]  ;;  %v244_v10 = vld [vmem:[%s3348_s3 + $0x1f0] sm:$0xff] }
  0x5c   :  { %531 = vmatpush.msra.mxu0 %v231_v11  ;;  %570 = vmatpush.msra.mxu2 %v363_v13  ;;  %v387_v58 = vld [vmem:[%s3348_s3 + $0x668] sm:$0xff]  ;;  %v308_v11 = vld [vmem:[%s3348_s3 + $0x3f0] sm:$0xff]  ;;  %v93_v13 = vperm.slane %v88_v1, 3 }
  0x5d   :  { %551 = vmatpush.msra.mxu1 %v295_v12  ;;  %590 = vmatpush.msra.mxu3 %v427_v14  ;;  %v319_v59 = vld [vmem:[%s3348_s3 + $0x448] sm:$0xff]  ;;  %v92_v12 = vperm.slane %v88_v1, 2  ;;  %v240_v14 = vld [vmem:[%s3348_s3 + $0x1d0] sm:$0xff] }
  0x5e   :  { %532 = vmatpush.msra.mxu0 %v227_v15  ;;  %571 = vmatpush.msra.mxu2 %v359_v17  ;;  %v383_v60 = vld [vmem:[%s3348_s3 + $0x648] sm:$0xff]  ;;  %v304_v15 = vld [vmem:[%s3348_s3 + $0x3d0] sm:$0xff] }
  0x5f   :  { %552 = vmatpush.msra.mxu1 %v291_v16  ;;  %591 = vmatpush.msra.mxu3 %v423_v18  ;;  %v315_v61 = vld [vmem:[%s3348_s3 + $0x428] sm:$0xff]  ;;  %v236_v18 = vld [vmem:[%s3348_s3 + $0x1b0] sm:$0xff] }
  0x60   :  { %533 = vmatpush.msra.mxu0 %v223_v19  ;;  %572 = vmatpush.msra.mxu2 %v355_v21  ;;  %v379_v62 = vld [vmem:[%s3348_s3 + $0x628] sm:$0xff]  ;;  %v300_v19 = vld [vmem:[%s3348_s3 + $0x3b0] sm:$0xff] }
  0x61   :  { %553 = vmatpush.msra.mxu1 %v287_v20  ;;  %592 = vmatpush.msra.mxu3 %v419_v22  ;;  %v311_v63 = vld [vmem:[%s3348_s3 + $0x408] sm:$0xff]  ;;  %v256_v1 = vld [vmem:[%s3348_s3 + $0x250] sm:$0xff] }
  0x62   :  { %534 = vmatpush.msra.mxu0 %v219_v23  ;;  %573 = vmatpush.msra.mxu2 %v351_v25  ;;  %v375_v0 = vld [vmem:[%s3348_s3 + $0x608] sm:$0xff]  ;;  %v296_v25 = vld [vmem:[%s3348_s3 + $0x390] sm:$0xff] }
  0x63   :  { %554 = vmatpush.msra.mxu1 %v283_v24  ;;  %593 = vmatpush.msra.mxu3 %v415_v26  ;;  %v232_v24 = vld [vmem:[%s3348_s3 + $0x190] sm:$0xff] }
  0x64   :  { %535 = vmatpush.msra.mxu0 %v215_v27  ;;  %574 = vmatpush.msra.mxu2 %v347_v29  ;;  %v372_v26 = vld [vmem:[%s3348_s3 + $0x5f0] sm:$0xff] }
  0x65   :  { %555 = vmatpush.msra.mxu1 %v279_v28  ;;  %594 = vmatpush.msra.mxu3 %v411_v30  ;;  %v436_v27 = vld [vmem:[%s3348_s3 + $0x7f0] sm:$0xff] }
  0x66   :  { %536 = vmatpush.msra.mxu0 %v211_v31  ;;  %575 = vmatpush.msra.mxu2 %v343_v33  ;;  %v292_v28 = vld [vmem:[%s3348_s3 + $0x370] sm:$0xff] }
  0x67   :  { %556 = vmatpush.msra.mxu1 %v275_v32  ;;  %595 = vmatpush.msra.mxu3 %v407_v34  ;;  %v228_v29 = vld [vmem:[%s3348_s3 + $0x170] sm:$0xff] }
  0x68   :  { %537 = vmatpush.msra.mxu0 %v207_v35  ;;  %576 = vmatpush.msra.mxu2 %v339_v37  ;;  %v368_v30 = vld [vmem:[%s3348_s3 + $0x5d0] sm:$0xff] }
  0x69   :  { %557 = vmatpush.msra.mxu1 %v271_v36  ;;  %596 = vmatpush.msra.mxu3 %v403_v38  ;;  %v432_v31 = vld [vmem:[%s3348_s3 + $0x7d0] sm:$0xff] }
  0x6a   :  { %538 = vmatpush.msra.mxu0 %v203_v39  ;;  %577 = vmatpush.msra.mxu2 %v335_v41  ;;  %v224_v32 = vld [vmem:[%s3348_s3 + $0x150] sm:$0xff] }
  0x6b   :  { %558 = vmatpush.msra.mxu1 %v267_v40  ;;  %597 = vmatpush.msra.mxu3 %v399_v42  ;;  %v288_v33 = vld [vmem:[%s3348_s3 + $0x350] sm:$0xff] }
  0x6c   :  { %539 = vmatpush.msra.mxu0 %v199_v43  ;;  %578 = vmatpush.msra.mxu2 %v331_v49  ;;  %v364_v34 = vld [vmem:[%s3348_s3 + $0x5b0] sm:$0xff] }
  0x6d   :  { %559 = vmatpush.msra.mxu1 %v263_v44  ;;  %598 = vmatpush.msra.mxu3 %v395_v50  ;;  %v428_v35 = vld [vmem:[%s3348_s3 + $0x7b0] sm:$0xff] }
  0x6e   :  { %540 = vmatpush.msra.mxu0 %v195_v45  ;;  %579 = vmatpush.msra.mxu2 %v327_v53  ;;  %v220_v36 = vld [vmem:[%s3348_s3 + $0x130] sm:$0xff] }
  0x6f   :  { %560 = vmatpush.msra.mxu1 %v259_v46  ;;  %599 = vmatpush.msra.mxu3 %v391_v54  ;;  %v284_v37 = vld [vmem:[%s3348_s3 + $0x330] sm:$0xff] }
  0x70   :  { %541 = vmatpush.msra.mxu0 %v191_v47  ;;  %580 = vmatpush.msra.mxu2 %v323_v57  ;;  %v360_v38 = vld [vmem:[%s3348_s3 + $0x590] sm:$0xff] }
  0x71   :  { %561 = vmatpush.msra.mxu1 %v255_v48  ;;  %600 = vmatpush.msra.mxu3 %v387_v58  ;;  %v424_v39 = vld [vmem:[%s3348_s3 + $0x790] sm:$0xff] }
  0x72   :  { %542 = vmatpush.msra.mxu0 %v187_v51  ;;  %581 = vmatpush.msra.mxu2 %v319_v59  ;;  %v216_v40 = vld [vmem:[%s3348_s3 + $0x110] sm:$0xff] }
  0x73   :  { %562 = vmatpush.msra.mxu1 %v251_v52  ;;  %601 = vmatpush.msra.mxu3 %v383_v60  ;;  %v280_v41 = vld [vmem:[%s3348_s3 + $0x310] sm:$0xff] }
  0x74   :  { %543 = vmatpush.msra.mxu0 %v183_v55  ;;  %582 = vmatpush.msra.mxu2 %v315_v61  ;;  %v356_v42 = vld [vmem:[%s3348_s3 + $0x570] sm:$0xff] }
  0x75   :  { %563 = vmatpush.msra.mxu1 %v247_v56  ;;  %602 = vmatpush.msra.mxu3 %v379_v62  ;;  %v420_v43 = vld [vmem:[%s3348_s3 + $0x770] sm:$0xff] }
  0x76   :  { %583 = vmatpush.msra.mxu2 %v311_v63  ;;  %v212_v44 = vld [vmem:[%s3348_s3 + $0xf0] sm:$0xff] }
  0x77   :  { %603 = vmatpush.msra.mxu3 %v375_v0  ;;  %v276_v45 = vld [vmem:[%s3348_s3 + $0x2f0] sm:$0xff] }
  0x78   :  { %v352_v46 = vld [vmem:[%s3348_s3 + $0x550] sm:$0xff] }
  0x79   :  { %v416_v47 = vld [vmem:[%s3348_s3 + $0x750] sm:$0xff] }
  0x7a   :  { %v208_v48 = vld [vmem:[%s3348_s3 + $0xd0] sm:$0xff] }
  0x7b   :  { %v272_v49 = vld [vmem:[%s3348_s3 + $0x2d0] sm:$0xff] }
  0x7c   :  { %v348_v50 = vld [vmem:[%s3348_s3 + $0x530] sm:$0xff] }
  0x7d   :  { %v412_v51 = vld [vmem:[%s3348_s3 + $0x730] sm:$0xff] }
  0x7e   :  { %v204_v52 = vld [vmem:[%s3348_s3 + $0xb0] sm:$0xff] }
  0x7f   :  { %v268_v53 = vld [vmem:[%s3348_s3 + $0x2b0] sm:$0xff] }
  0x80   :  { %v344_v54 = vld [vmem:[%s3348_s3 + $0x510] sm:$0xff] }
  0x81   :  { %v408_v55 = vld [vmem:[%s3348_s3 + $0x710] sm:$0xff] }
  0x82   :  { %v200_v56 = vld [vmem:[%s3348_s3 + $0x90] sm:$0xff] }
  0x83   :  { %v264_v57 = vld [vmem:[%s3348_s3 + $0x290] sm:$0xff] }
  0x84   :  { %v340_v58 = vld [vmem:[%s3348_s3 + $0x4f0] sm:$0xff] }
  0x85   :  { %v404_v59 = vld [vmem:[%s3348_s3 + $0x6f0] sm:$0xff] }
  0x86   :  { %v196_v60 = vld [vmem:[%s3348_s3 + $0x70] sm:$0xff] }
  0x87   :  { %v260_v61 = vld [vmem:[%s3348_s3 + $0x270] sm:$0xff] }
  0x88   :  { %v336_v62 = vld [vmem:[%s3348_s3 + $0x4d0] sm:$0xff] }
  0x89   :  { %v400_v63 = vld [vmem:[%s3348_s3 + $0x6d0] sm:$0xff] }
  0x8a   :  { %v192_v0 = vld [vmem:[%s3348_s3 + $0x50] sm:$0xff] }
  0x9f   :  { %v115_v4 = vpop.f32.mrf.mxu0  ;;  %v135_v5 = vpop.f32.mrf.mxu1 }
  0xa0   :  { %v116_v6 = vadd.f32 %v115_v4, %v90_v2  ;;  %v136_v7 = vadd.f32 %v135_v5, %v91_v3  ;;  %v332_v2 = vld [vmem:[%s3348_s3 + $0x4b0] sm:$0xff] }
  0xa1   :  { %v396_v3 = vld [vmem:[%s3348_s3 + $0x6b0] sm:$0xff] }
  0xa2   :  { %v2081_v8 = vmax.f32 %v116_v6, 0.0  ;;  %v2083_v9 = vmax.f32 %v136_v7, 0.0  ;;  %v188_v4 = vld [vmem:[%s3348_s3 + $0x30] sm:$0xff] }
  0xa3   :  { %v252_v5 = vld [vmem:[%s3348_s3 + $0x230] sm:$0xff] }
  0xa4   :  { %464 = vmatmul.f32.vlgmr.msrb.gmra.mxu0 %v2081_v8  ;;  %484 = vmatmul.f32.vlgmr.msrb.gmra.mxu1 %v2083_v9  ;;  %v328_v6 = vld [vmem:[%s3348_s3 + $0x490] sm:$0xff] }
  0xa5   :  { %608 = vmatpush.msrb.mxu0 %v244_v10  ;;  %628 = vmatpush.msrb.mxu1 %v308_v11  ;;  %v392_v7 = vld [vmem:[%s3348_s3 + $0x690] sm:$0xff] }
  0xa6   :  { %v155_v16 = vpop.f32.mrf.mxu2  ;;  %v175_v17 = vpop.f32.mrf.mxu3  ;;  %v184_v10 = vld [vmem:[%s3348_s3 + $0x10] sm:$0xff] }
  0xa7   :  { %v156_v20 = vadd.f32 %v155_v16, %v92_v12  ;;  %v176_v21 = vadd.f32 %v175_v17, %v93_v13  ;;  %609 = vmatpush.msrb.mxu0 %v240_v14  ;;  %629 = vmatpush.msrb.mxu1 %v304_v15  ;;  %v248_v11 = vld [vmem:[%s3348_s3 + $0x210] sm:$0xff]  ;;  %v245_v14 = vld [vmem:[%s3348_s3 + $0x1f8] sm:$0xff] }
  0xa8   :  { %v324_v12 = vld [vmem:[%s3348_s3 + $0x470] sm:$0xff]  ;;  %v309_v15 = vld [vmem:[%s3348_s3 + $0x3f8] sm:$0xff] }
  0xa9   :  { %v2105_v22 = vmax.f32 %v156_v20, 0.0  ;;  %v2107_v23 = vmax.f32 %v176_v21, 0.0  ;;  %610 = vmatpush.msrb.mxu0 %v236_v18  ;;  %630 = vmatpush.msrb.mxu1 %v300_v19  ;;  %v388_v13 = vld [vmem:[%s3348_s3 + $0x670] sm:$0xff]  ;;  %v241_v18 = vld [vmem:[%s3348_s3 + $0x1d8] sm:$0xff] }
  0xaa   :  { %v320_v16 = vld [vmem:[%s3348_s3 + $0x450] sm:$0xff]  ;;  %v305_v19 = vld [vmem:[%s3348_s3 + $0x3d8] sm:$0xff] }
  0xab   :  { %504 = vmatmul.f32.vlgmr.msrb.gmra.mxu2 %v2105_v22  ;;  %524 = vmatmul.f32.vlgmr.msrb.gmra.mxu3 %v2107_v23  ;;  %v384_v17 = vld [vmem:[%s3348_s3 + $0x650] sm:$0xff] }
  0xac   :  { %611 = vmatpush.msrb.mxu0 %v232_v24  ;;  %631 = vmatpush.msrb.mxu1 %v296_v25  ;;  %v316_v20 = vld [vmem:[%s3348_s3 + $0x430] sm:$0xff]  ;;  %v237_v24 = vld [vmem:[%s3348_s3 + $0x1b8] sm:$0xff] }
  0xad   :  { %648 = vmatpush.msrb.mxu2 %v372_v26  ;;  %668 = vmatpush.msrb.mxu3 %v436_v27  ;;  %v380_v21 = vld [vmem:[%s3348_s3 + $0x630] sm:$0xff]  ;;  %v301_v25 = vld [vmem:[%s3348_s3 + $0x3b8] sm:$0xff] }
  0xae   :  { %544 = vmatmul.f32.vlgmr.msra.gmra.mxu0 %v2081_v8  ;;  %632 = vmatpush.msrb.mxu1 %v292_v28  ;;  %v312_v26 = vld [vmem:[%s3348_s3 + $0x410] sm:$0xff]  ;;  %v233_v28 = vld [vmem:[%s3348_s3 + $0x198] sm:$0xff] }
  0xaf   :  { %612 = vmatpush.msrb.mxu0 %v228_v29  ;;  %649 = vmatpush.msrb.mxu2 %v368_v30  ;;  %v376_v27 = vld [vmem:[%s3348_s3 + $0x610] sm:$0xff]  ;;  %v297_v29 = vld [vmem:[%s3348_s3 + $0x398] sm:$0xff] }
  0xb0   :  { %669 = vmatpush.msrb.mxu3 %v432_v31  ;;  %564 = vmatmul.f32.vlgmr.msra.gmra.mxu1 %v2083_v9  ;;  %v373_v30 = vld [vmem:[%s3348_s3 + $0x5f8] sm:$0xff] }
  0xb1   :  { %613 = vmatpush.msrb.mxu0 %v224_v32  ;;  %633 = vmatpush.msrb.mxu1 %v288_v33  ;;  %v437_v31 = vld [vmem:[%s3348_s3 + $0x7f8] sm:$0xff] }
  0xb2   :  { %650 = vmatpush.msrb.mxu2 %v364_v34  ;;  %670 = vmatpush.msrb.mxu3 %v428_v35  ;;  %v229_v32 = vld [vmem:[%s3348_s3 + $0x178] sm:$0xff] }
  0xb3   :  { %614 = vmatpush.msrb.mxu0 %v220_v36  ;;  %634 = vmatpush.msrb.mxu1 %v284_v37  ;;  %v293_v33 = vld [vmem:[%s3348_s3 + $0x378] sm:$0xff] }
  0xb4   :  { %651 = vmatpush.msrb.mxu2 %v360_v38  ;;  %671 = vmatpush.msrb.mxu3 %v424_v39  ;;  %v369_v34 = vld [vmem:[%s3348_s3 + $0x5d8] sm:$0xff] }
  0xb5   :  { %584 = vmatmul.f32.vlgmr.msra.gmra.mxu2 %v2105_v22  ;;  %604 = vmatmul.f32.vlgmr.msra.gmra.mxu3 %v2107_v23  ;;  %v433_v35 = vld [vmem:[%s3348_s3 + $0x7d8] sm:$0xff] }
  0xb6   :  { %615 = vmatpush.msrb.mxu0 %v216_v40  ;;  %635 = vmatpush.msrb.mxu1 %v280_v41  ;;  %v225_v36 = vld [vmem:[%s3348_s3 + $0x158] sm:$0xff] }
  0xb7   :  { %652 = vmatpush.msrb.mxu2 %v356_v42  ;;  %672 = vmatpush.msrb.mxu3 %v420_v43  ;;  %v289_v37 = vld [vmem:[%s3348_s3 + $0x358] sm:$0xff] }
  0xb8   :  { %616 = vmatpush.msrb.mxu0 %v212_v44  ;;  %636 = vmatpush.msrb.mxu1 %v276_v45  ;;  %v365_v38 = vld [vmem:[%s3348_s3 + $0x5b8] sm:$0xff] }
  0xb9   :  { %653 = vmatpush.msrb.mxu2 %v352_v46  ;;  %673 = vmatpush.msrb.mxu3 %v416_v47  ;;  %v429_v39 = vld [vmem:[%s3348_s3 + $0x7b8] sm:$0xff] }
  0xba   :  { %617 = vmatpush.msrb.mxu0 %v208_v48  ;;  %637 = vmatpush.msrb.mxu1 %v272_v49  ;;  %v221_v40 = vld [vmem:[%s3348_s3 + $0x138] sm:$0xff] }
  0xbb   :  { %654 = vmatpush.msrb.mxu2 %v348_v50  ;;  %674 = vmatpush.msrb.mxu3 %v412_v51  ;;  %v285_v41 = vld [vmem:[%s3348_s3 + $0x338] sm:$0xff] }
  0xbc   :  { %618 = vmatpush.msrb.mxu0 %v204_v52  ;;  %638 = vmatpush.msrb.mxu1 %v268_v53  ;;  %v361_v42 = vld [vmem:[%s3348_s3 + $0x598] sm:$0xff] }
  0xbd   :  { %655 = vmatpush.msrb.mxu2 %v344_v54  ;;  %675 = vmatpush.msrb.mxu3 %v408_v55  ;;  %v425_v43 = vld [vmem:[%s3348_s3 + $0x798] sm:$0xff] }
  0xbe   :  { %619 = vmatpush.msrb.mxu0 %v200_v56  ;;  %639 = vmatpush.msrb.mxu1 %v264_v57  ;;  %v217_v44 = vld [vmem:[%s3348_s3 + $0x118] sm:$0xff] }
  0xbf   :  { %656 = vmatpush.msrb.mxu2 %v340_v58  ;;  %676 = vmatpush.msrb.mxu3 %v404_v59  ;;  %v281_v45 = vld [vmem:[%s3348_s3 + $0x318] sm:$0xff] }
  0xc0   :  { %620 = vmatpush.msrb.mxu0 %v196_v60  ;;  %640 = vmatpush.msrb.mxu1 %v260_v61  ;;  %v357_v46 = vld [vmem:[%s3348_s3 + $0x578] sm:$0xff] }
  0xc1   :  { %657 = vmatpush.msrb.mxu2 %v336_v62  ;;  %677 = vmatpush.msrb.mxu3 %v400_v63  ;;  %v421_v47 = vld [vmem:[%s3348_s3 + $0x778] sm:$0xff] }
  0xc2   :  { %621 = vmatpush.msrb.mxu0 %v192_v0  ;;  %641 = vmatpush.msrb.mxu1 %v256_v1  ;;  %v213_v48 = vld [vmem:[%s3348_s3 + $0xf8] sm:$0xff] }
  0xc3   :  { %658 = vmatpush.msrb.mxu2 %v332_v2  ;;  %678 = vmatpush.msrb.mxu3 %v396_v3  ;;  %v277_v49 = vld [vmem:[%s3348_s3 + $0x2f8] sm:$0xff] }
  0xc4   :  { %622 = vmatpush.msrb.mxu0 %v188_v4  ;;  %642 = vmatpush.msrb.mxu1 %v252_v5  ;;  %v353_v50 = vld [vmem:[%s3348_s3 + $0x558] sm:$0xff] }
  0xc5   :  { %659 = vmatpush.msrb.mxu2 %v328_v6  ;;  %679 = vmatpush.msrb.mxu3 %v392_v7  ;;  %v417_v51 = vld [vmem:[%s3348_s3 + $0x758] sm:$0xff] }
  0xc6   :  { %623 = vmatpush.msrb.mxu0 %v184_v10  ;;  %643 = vmatpush.msrb.mxu1 %v248_v11  ;;  %v209_v52 = vld [vmem:[%s3348_s3 + $0xd8] sm:$0xff] }
  0xc7   :  { %660 = vmatpush.msrb.mxu2 %v324_v12  ;;  %680 = vmatpush.msrb.mxu3 %v388_v13  ;;  %v273_v53 = vld [vmem:[%s3348_s3 + $0x2d8] sm:$0xff] }
  0xc8   :  { %624 = vmatmul.f32.vlgmr.msrb.gmra.mxu0 %v2081_v8  ;;  %644 = vmatmul.f32.vlgmr.msrb.gmra.mxu1 %v2083_v9  ;;  %v349_v54 = vld [vmem:[%s3348_s3 + $0x538] sm:$0xff] }
  0xc9   :  { %688 = vmatpush.msra.mxu0 %v245_v14  ;;  %708 = vmatpush.msra.mxu1 %v309_v15  ;;  %v413_v55 = vld [vmem:[%s3348_s3 + $0x738] sm:$0xff] }
  0xca   :  { %661 = vmatpush.msrb.mxu2 %v320_v16  ;;  %681 = vmatpush.msrb.mxu3 %v384_v17  ;;  %v205_v56 = vld [vmem:[%s3348_s3 + $0xb8] sm:$0xff] }
  0xcb   :  { %689 = vmatpush.msra.mxu0 %v241_v18  ;;  %709 = vmatpush.msra.mxu1 %v305_v19  ;;  %v269_v57 = vld [vmem:[%s3348_s3 + $0x2b8] sm:$0xff] }
  0xcc   :  { %662 = vmatpush.msrb.mxu2 %v316_v20  ;;  %682 = vmatpush.msrb.mxu3 %v380_v21  ;;  %v345_v58 = vld [vmem:[%s3348_s3 + $0x518] sm:$0xff] }
  0xcd   :  { %690 = vmatpush.msra.mxu0 %v237_v24  ;;  %710 = vmatpush.msra.mxu1 %v301_v25  ;;  %v409_v59 = vld [vmem:[%s3348_s3 + $0x718] sm:$0xff] }
  0xce   :  { %663 = vmatpush.msrb.mxu2 %v312_v26  ;;  %683 = vmatpush.msrb.mxu3 %v376_v27  ;;  %v201_v60 = vld [vmem:[%s3348_s3 + $0x98] sm:$0xff] }
  0xcf   :  { %664 = vmatmul.f32.vlgmr.msrb.gmra.mxu2 %v2105_v22  ;;  %684 = vmatmul.f32.vlgmr.msrb.gmra.mxu3 %v2107_v23  ;;  %v265_v61 = vld [vmem:[%s3348_s3 + $0x298] sm:$0xff] }
  0xd0   :  { %691 = vmatpush.msra.mxu0 %v233_v28  ;;  %711 = vmatpush.msra.mxu1 %v297_v29  ;;  %v341_v62 = vld [vmem:[%s3348_s3 + $0x4f8] sm:$0xff]  ;;  %v850_v29 = vld [vmem:[%s3350_s5 + $0x1e0] sm:$0xff] }
  0xd1   :  { %728 = vmatpush.msra.mxu2 %v373_v30  ;;  %748 = vmatpush.msra.mxu3 %v437_v31  ;;  %v405_v63 = vld [vmem:[%s3348_s3 + $0x6f8] sm:$0xff]  ;;  %v914_v30 = vld [vmem:[%s3350_s5 + $0x3e0] sm:$0xff] }
  0xd2   :  { %692 = vmatpush.msra.mxu0 %v229_v32  ;;  %712 = vmatpush.msra.mxu1 %v293_v33  ;;  %v197_v0 = vld [vmem:[%s3348_s3 + $0x78] sm:$0xff]  ;;  %v846_v31 = vld [vmem:[%s3350_s5 + $0x1c0] sm:$0xff] }
  0xd3   :  { %729 = vmatpush.msra.mxu2 %v369_v34  ;;  %749 = vmatpush.msra.mxu3 %v433_v35  ;;  %v261_v1 = vld [vmem:[%s3348_s3 + $0x278] sm:$0xff]  ;;  %v910_v32 = vld [vmem:[%s3350_s5 + $0x3c0] sm:$0xff] }
  0xd4   :  { %693 = vmatpush.msra.mxu0 %v225_v36  ;;  %713 = vmatpush.msra.mxu1 %v289_v37  ;;  %v337_v2 = vld [vmem:[%s3348_s3 + $0x4d8] sm:$0xff]  ;;  %v974_v33 = vld [vmem:[%s3350_s5 + $0x5c0] sm:$0xff] }
  0xd5   :  { %730 = vmatpush.msra.mxu2 %v365_v38  ;;  %750 = vmatpush.msra.mxu3 %v429_v39  ;;  %v401_v3 = vld [vmem:[%s3348_s3 + $0x6d8] sm:$0xff]  ;;  %v1038_v34 = vld [vmem:[%s3350_s5 + $0x7c0] sm:$0xff] }
  0xd6   :  { %694 = vmatpush.msra.mxu0 %v221_v40  ;;  %714 = vmatpush.msra.mxu1 %v285_v41  ;;  %v193_v4 = vld [vmem:[%s3348_s3 + $0x58] sm:$0xff]  ;;  %v842_v35 = vld [vmem:[%s3350_s5 + $0x1a0] sm:$0xff] }
  0xd7   :  { %731 = vmatpush.msra.mxu2 %v361_v42  ;;  %751 = vmatpush.msra.mxu3 %v425_v43  ;;  %v257_v5 = vld [vmem:[%s3348_s3 + $0x258] sm:$0xff]  ;;  %v906_v36 = vld [vmem:[%s3350_s5 + $0x3a0] sm:$0xff] }
  0xd8   :  { %695 = vmatpush.msra.mxu0 %v217_v44  ;;  %715 = vmatpush.msra.mxu1 %v281_v45  ;;  %v333_v6 = vld [vmem:[%s3348_s3 + $0x4b8] sm:$0xff]  ;;  %v970_v37 = vld [vmem:[%s3350_s5 + $0x5a0] sm:$0xff] }
  0xd9   :  { %732 = vmatpush.msra.mxu2 %v357_v46  ;;  %752 = vmatpush.msra.mxu3 %v421_v47  ;;  %v397_v7 = vld [vmem:[%s3348_s3 + $0x6b8] sm:$0xff]  ;;  %v1034_v38 = vld [vmem:[%s3350_s5 + $0x7a0] sm:$0xff] }
  0xda   :  { %696 = vmatpush.msra.mxu0 %v213_v48  ;;  %716 = vmatpush.msra.mxu1 %v277_v49  ;;  %v189_v10 = vld [vmem:[%s3348_s3 + $0x38] sm:$0xff]  ;;  %v2534_v39 = vld [vmem:[%s3351_s4] sm:$0xf] }
  0xdb   :  { %733 = vmatpush.msra.mxu2 %v353_v50  ;;  %753 = vmatpush.msra.mxu3 %v417_v51  ;;  %v253_v11 = vld [vmem:[%s3348_s3 + $0x238] sm:$0xff]  ;;  %v838_v41 = vld [vmem:[%s3350_s5 + $0x180] sm:$0xff]  ;;  %v440_v49 = vperm.slane %v2534_v39, 0  ;;  %v441_v50 = vperm.slane %v2534_v39, 1 }
  0xdc   :  { %697 = vmatpush.msra.mxu0 %v209_v52  ;;  %717 = vmatpush.msra.mxu1 %v273_v53  ;;  %v329_v12 = vld [vmem:[%s3348_s3 + $0x498] sm:$0xff]  ;;  %v902_v42 = vld [vmem:[%s3350_s5 + $0x380] sm:$0xff] }
  0xdd   :  { %734 = vmatpush.msra.mxu2 %v349_v54  ;;  %754 = vmatpush.msra.mxu3 %v413_v55  ;;  %v393_v13 = vld [vmem:[%s3348_s3 + $0x698] sm:$0xff]  ;;  %v966_v43 = vld [vmem:[%s3350_s5 + $0x580] sm:$0xff] }
  0xde   :  { %698 = vmatpush.msra.mxu0 %v205_v56  ;;  %718 = vmatpush.msra.mxu1 %v269_v57  ;;  %v185_v14 = vld [vmem:[%s3348_s3 + $0x18] sm:$0xff]  ;;  %v1030_v44 = vld [vmem:[%s3350_s5 + $0x780] sm:$0xff]  ;;  %v442_v56 = vperm.slane %v2534_v39, 2 }
  0xdf   :  { %735 = vmatpush.msra.mxu2 %v345_v58  ;;  %755 = vmatpush.msra.mxu3 %v409_v59  ;;  %v249_v15 = vld [vmem:[%s3348_s3 + $0x218] sm:$0xff]  ;;  %v834_v47 = vld [vmem:[%s3350_s5 + $0x160] sm:$0xff] }
  0xe0   :  { %699 = vmatpush.msra.mxu0 %v201_v60  ;;  %719 = vmatpush.msra.mxu1 %v265_v61  ;;  %v325_v16 = vld [vmem:[%s3348_s3 + $0x478] sm:$0xff]  ;;  %v898_v48 = vld [vmem:[%s3350_s5 + $0x360] sm:$0xff] }
  0xe1   :  { %736 = vmatpush.msra.mxu2 %v341_v62  ;;  %756 = vmatpush.msra.mxu3 %v405_v63  ;;  %v389_v17 = vld [vmem:[%s3348_s3 + $0x678] sm:$0xff]  ;;  %v962_v51 = vld [vmem:[%s3350_s5 + $0x560] sm:$0xff] }
  0xe2   :  { %700 = vmatpush.msra.mxu0 %v197_v0  ;;  %720 = vmatpush.msra.mxu1 %v261_v1  ;;  %v321_v18 = vld [vmem:[%s3348_s3 + $0x458] sm:$0xff]  ;;  %v1026_v52 = vld [vmem:[%s3350_s5 + $0x760] sm:$0xff] }
  0xe3   :  { %737 = vmatpush.msra.mxu2 %v337_v2  ;;  %757 = vmatpush.msra.mxu3 %v401_v3  ;;  %v385_v19 = vld [vmem:[%s3348_s3 + $0x658] sm:$0xff]  ;;  %v830_v54 = vld [vmem:[%s3350_s5 + $0x140] sm:$0xff] }
  0xe4   :  { %701 = vmatpush.msra.mxu0 %v193_v4  ;;  %721 = vmatpush.msra.mxu1 %v257_v5  ;;  %v317_v20 = vld [vmem:[%s3348_s3 + $0x438] sm:$0xff]  ;;  %v894_v55 = vld [vmem:[%s3350_s5 + $0x340] sm:$0xff]  ;;  %v443_v5 = vperm.slane %v2534_v39, 3 }
  0xe5   :  { %738 = vmatpush.msra.mxu2 %v333_v6  ;;  %758 = vmatpush.msra.mxu3 %v397_v7  ;;  %v381_v21 = vld [vmem:[%s3348_s3 + $0x638] sm:$0xff]  ;;  %v958_v57 = vld [vmem:[%s3350_s5 + $0x540] sm:$0xff] }
  0xe6   :  { %702 = vmatpush.msra.mxu0 %v189_v10  ;;  %722 = vmatpush.msra.mxu1 %v253_v11  ;;  %v313_v24 = vld [vmem:[%s3348_s3 + $0x418] sm:$0xff]  ;;  %v1022_v58 = vld [vmem:[%s3350_s5 + $0x740] sm:$0xff] }
  0xe7   :  { %739 = vmatpush.msra.mxu2 %v329_v12  ;;  %759 = vmatpush.msra.mxu3 %v393_v13  ;;  %v826_v59 = vld [vmem:[%s3350_s5 + $0x120] sm:$0xff] }
  0xe8   :  { %703 = vmatpush.msra.mxu0 %v185_v14  ;;  %723 = vmatpush.msra.mxu1 %v249_v15  ;;  %v890_v60 = vld [vmem:[%s3350_s5 + $0x320] sm:$0xff] }
  0xe9   :  { %740 = vmatpush.msra.mxu2 %v325_v16  ;;  %760 = vmatpush.msra.mxu3 %v389_v17  ;;  %v954_v63 = vld [vmem:[%s3350_s5 + $0x520] sm:$0xff] }
  0xea   :  { %704 = vmatmul.f32.vlgmr.msra.gmra.mxu0 %v2081_v8  ;;  %724 = vmatmul.f32.vlgmr.msra.gmra.mxu1 %v2083_v9  ;;  %v377_v8 = vld [vmem:[%s3348_s3 + $0x618] sm:$0xff]  ;;  %v1018_v0 = vld [vmem:[%s3350_s5 + $0x720] sm:$0xff] }
  0xeb   :  { %741 = vmatpush.msra.mxu2 %v321_v18  ;;  %761 = vmatpush.msra.mxu3 %v385_v19  ;;  %v822_v2 = vld [vmem:[%s3350_s5 + $0x100] sm:$0xff] }
  0xec   :  { %1046 = vmatpush.msrb.mxu0 %v850_v29  ;;  %1066 = vmatpush.msrb.mxu1 %v914_v30  ;;  %v886_v3 = vld [vmem:[%s3350_s5 + $0x300] sm:$0xff] }
  0xed   :  { %742 = vmatpush.msra.mxu2 %v317_v20  ;;  %762 = vmatpush.msra.mxu3 %v381_v21  ;;  %v950_v6 = vld [vmem:[%s3350_s5 + $0x500] sm:$0xff] }
  0xee   :  { %1047 = vmatpush.msrb.mxu0 %v846_v31  ;;  %1067 = vmatpush.msrb.mxu1 %v910_v32  ;;  %v1014_v7 = vld [vmem:[%s3350_s5 + $0x700] sm:$0xff] }
  0xef   :  { %743 = vmatpush.msra.mxu2 %v313_v24  ;;  %763 = vmatpush.msra.mxu3 %v377_v8  ;;  %v818_v12 = vld [vmem:[%s3350_s5 + $0xe0] sm:$0xff] }
  0xf0   :  { %744 = vmatmul.f32.vlgmr.msra.gmra.mxu2 %v2105_v22  ;;  %764 = vmatmul.f32.vlgmr.msra.gmra.mxu3 %v2107_v23  ;;  %v978_v22 = vld [vmem:[%s3350_s5 + $0x5e0] sm:$0xff] }
  0xf1   :  { %v1042_v23 = vld [vmem:[%s3350_s5 + $0x7e0] sm:$0xff]  ;;  %1086 = vmatpush.msrb.mxu2 %v978_v22  ;;  %1048 = vmatpush.msrb.mxu0 %v842_v35 }
  0xf2   :  { %1106 = vmatpush.msrb.mxu3 %v1042_v23  ;;  %1068 = vmatpush.msrb.mxu1 %v906_v36  ;;  %v882_v13 = vld [vmem:[%s3350_s5 + $0x2e0] sm:$0xff] }
  0xf3   :  { %1087 = vmatpush.msrb.mxu2 %v974_v33  ;;  %1049 = vmatpush.msrb.mxu0 %v838_v41  ;;  %v946_v16 = vld [vmem:[%s3350_s5 + $0x4e0] sm:$0xff] }
  0xf4   :  { %1107 = vmatpush.msrb.mxu3 %v1038_v34  ;;  %1069 = vmatpush.msrb.mxu1 %v902_v42  ;;  %v1010_v17 = vld [vmem:[%s3350_s5 + $0x6e0] sm:$0xff] }
  0xf5   :  { %1088 = vmatpush.msrb.mxu2 %v970_v37  ;;  %1050 = vmatpush.msrb.mxu0 %v834_v47  ;;  %v814_v19 = vld [vmem:[%s3350_s5 + $0xc0] sm:$0xff] }
  0xf6   :  { %1108 = vmatpush.msrb.mxu3 %v1034_v38  ;;  %1070 = vmatpush.msrb.mxu1 %v898_v48  ;;  %v878_v20 = vld [vmem:[%s3350_s5 + $0x2c0] sm:$0xff] }
  0xf7   :  { %1089 = vmatpush.msrb.mxu2 %v966_v43  ;;  %1051 = vmatpush.msrb.mxu0 %v830_v54  ;;  %v874_v29 = vld [vmem:[%s3350_s5 + $0x2a0] sm:$0xff] }
  0xf8   :  { %1109 = vmatpush.msrb.mxu3 %v1030_v44  ;;  %1071 = vmatpush.msrb.mxu1 %v894_v55  ;;  %v938_v23 = vld [vmem:[%s3350_s5 + $0x4a0] sm:$0xff] }
  0xf9   :  { %1090 = vmatpush.msrb.mxu2 %v962_v51  ;;  %1052 = vmatpush.msrb.mxu0 %v826_v59  ;;  %v1002_v31 = vld [vmem:[%s3350_s5 + $0x6a0] sm:$0xff] }
  0xfa   :  { %1110 = vmatpush.msrb.mxu3 %v1026_v52  ;;  %1072 = vmatpush.msrb.mxu1 %v890_v60  ;;  %v806_v33 = vld [vmem:[%s3350_s5 + $0x80] sm:$0xff] }
  0xfb   :  { %1091 = vmatpush.msrb.mxu2 %v958_v57  ;;  %1053 = vmatpush.msrb.mxu0 %v822_v2  ;;  %v934_v36 = vld [vmem:[%s3350_s5 + $0x480] sm:$0xff]  ;;  %v851_v2 = vld [vmem:[%s3350_s5 + $0x1e8] sm:$0xff] }
  0xfc   :  { %1111 = vmatpush.msrb.mxu3 %v1022_v58  ;;  %1073 = vmatpush.msrb.mxu1 %v886_v3  ;;  %v998_v37 = vld [vmem:[%s3350_s5 + $0x680] sm:$0xff]  ;;  %v915_v3 = vld [vmem:[%s3350_s5 + $0x3e8] sm:$0xff] }
  0xfd   :  { %1092 = vmatpush.msrb.mxu2 %v954_v63  ;;  %1054 = vmatpush.msrb.mxu0 %v818_v12  ;;  %v802_v39 = vld [vmem:[%s3350_s5 + $0x60] sm:$0xff]  ;;  %v843_v12 = vld [vmem:[%s3350_s5 + $0x1a8] sm:$0xff] }
  0xfe   :  { %1112 = vmatpush.msrb.mxu3 %v1018_v0  ;;  %1074 = vmatpush.msrb.mxu1 %v882_v13  ;;  %v930_v44 = vld [vmem:[%s3350_s5 + $0x460] sm:$0xff]  ;;  %v907_v13 = vld [vmem:[%s3350_s5 + $0x3a8] sm:$0xff] }
  0xff   :  { %1093 = vmatpush.msrb.mxu2 %v950_v6  ;;  %1055 = vmatpush.msrb.mxu0 %v814_v19  ;;  %v862_v47 = vld [vmem:[%s3350_s5 + $0x240] sm:$0xff]  ;;  %v847_v6 = vld [vmem:[%s3350_s5 + $0x1c8] sm:$0xff] }
 0x100   :  { %1113 = vmatpush.msrb.mxu3 %v1014_v7  ;;  %1075 = vmatpush.msrb.mxu1 %v878_v20  ;;  %v990_v51 = vld [vmem:[%s3350_s5 + $0x640] sm:$0xff]  ;;  %v911_v7 = vld [vmem:[%s3350_s5 + $0x3c8] sm:$0xff] }
 0x101   :  { %1094 = vmatpush.msrb.mxu2 %v946_v16  ;;  %v794_v52 = vld [vmem:[%s3350_s5 + $0x20] sm:$0xff]  ;;  %v839_v16 = vld [vmem:[%s3350_s5 + $0x188] sm:$0xff] }
 0x102   :  { %1114 = vmatpush.msrb.mxu3 %v1010_v17  ;;  %1076 = vmatpush.msrb.mxu1 %v874_v29  ;;  %v922_v57 = vld [vmem:[%s3350_s5 + $0x420] sm:$0xff]  ;;  %v903_v17 = vld [vmem:[%s3350_s5 + $0x388] sm:$0xff] }
 0x103   :  { %v986_v58 = vld [vmem:[%s3350_s5 + $0x620] sm:$0xff]  ;;  %v1031_v19 = vld [vmem:[%s3350_s5 + $0x788] sm:$0xff] }
 0x104   :  { %v918_v63 = vld [vmem:[%s3350_s5 + $0x400] sm:$0xff]  ;;  %v835_v20 = vld [vmem:[%s3350_s5 + $0x168] sm:$0xff] }
 0x105   :  { %v1023_v29 = vld [vmem:[%s3350_s5 + $0x748] sm:$0xff] }
 0x121   :  { %v465_v9 = vpop.f32.mrf.mxu0  ;;  %v2489_v25 = vpop.f32.mrf.mxu1 }
 0x122   :  { %v466_v61 = vadd.f32 %v465_v9, %v440_v49  ;;  %v942_v9 = vld [vmem:[%s3350_s5 + $0x4c0] sm:$0xff] }
 0x123   :  { %1095 = vmatpush.msrb.mxu2 %v942_v9  ;;  %v831_v9 = vld [vmem:[%s3350_s5 + $0x148] sm:$0xff] }
 0x124   :  { %v486_v14 = vadd.f32 %v2489_v25, %v466_v61  ;;  %v1006_v25 = vld [vmem:[%s3350_s5 + $0x6c0] sm:$0xff] }
 0x125   :  { %1115 = vmatpush.msrb.mxu3 %v1006_v25  ;;  %1096 = vmatpush.msrb.mxu2 %v938_v23  ;;  %v790_v61 = vld [vmem:[%s3350_s5] sm:$0xff]  ;;  %v895_v25 = vld [vmem:[%s3350_s5 + $0x348] sm:$0xff] }
 0x126   :  { %v955_v23 = vld [vmem:[%s3350_s5 + $0x528] sm:$0xff] }
 0x127   :  { %1116 = vmatpush.msrb.mxu3 %v1002_v31  ;;  %1097 = vmatpush.msrb.mxu2 %v934_v36  ;;  %v1019_v31 = vld [vmem:[%s3350_s5 + $0x728] sm:$0xff] }
 0x128   :  { %v819_v36 = vld [vmem:[%s3350_s5 + $0xe8] sm:$0xff] }
 0x129   :  { %1117 = vmatpush.msrb.mxu3 %v998_v37  ;;  %1098 = vmatpush.msrb.mxu2 %v930_v44  ;;  %v883_v37 = vld [vmem:[%s3350_s5 + $0x2e8] sm:$0xff] }
 0x12a   :  { %v943_v44 = vld [vmem:[%s3350_s5 + $0x4c8] sm:$0xff] }
 0x12b   :  { %v545_v27 = vpop.f32.mrf.mxu0 }
 0x12c   :  { %v546_v62 = vadd.f32 %v545_v27, %v441_v50  ;;  %v810_v27 = vld [vmem:[%s3350_s5 + $0xa0] sm:$0xff] }
 0x12d   :  { %v565_v40 = vpop.f32.mrf.mxu1  ;;  %1056 = vmatpush.msrb.mxu0 %v810_v27  ;;  %v926_v50 = vld [vmem:[%s3350_s5 + $0x440] sm:$0xff]  ;;  %v959_v27 = vld [vmem:[%s3350_s5 + $0x548] sm:$0xff] }
 0x12e   :  { %v2491_v26 = vpop.f32.mrf.mxu2  ;;  %v2493_v28 = vpop.f32.mrf.mxu3  ;;  %v566_v15 = vadd.f32 %v565_v40, %v546_v62  ;;  %v866_v40 = vld [vmem:[%s3350_s5 + $0x260] sm:$0xff]  ;;  %1099 = vmatpush.msrb.mxu2 %v926_v50  ;;  %v807_v50 = vld [vmem:[%s3350_s5 + $0x88] sm:$0xff] }
 0x12f   :  { %v506_v30 = vadd.f32 %v2491_v26, %v486_v14  ;;  %v870_v26 = vld [vmem:[%s3350_s5 + $0x280] sm:$0xff]  ;;  %1057 = vmatpush.msrb.mxu0 %v806_v33  ;;  %v971_v14 = vld [vmem:[%s3350_s5 + $0x5a8] sm:$0xff] }
 0x130   :  { %1077 = vmatpush.msrb.mxu1 %v870_v26  ;;  %v854_v62 = vld [vmem:[%s3350_s5 + $0x200] sm:$0xff]  ;;  %1100 = vmatpush.msrb.mxu2 %v922_v57  ;;  %v887_v33 = vld [vmem:[%s3350_s5 + $0x308] sm:$0xff] }
 0x131   :  { %v2662_v41 = vadd.f32 %v2493_v28, %v506_v30  ;;  %v798_v28 = vld [vmem:[%s3350_s5 + $0x40] sm:$0xff]  ;;  %1058 = vmatpush.msrb.mxu0 %v802_v39  ;;  %v827_v30 = vld [vmem:[%s3350_s5 + $0x128] sm:$0xff] }
 0x132   :  { %1078 = vmatpush.msrb.mxu1 %v866_v40  ;;  %1101 = vmatpush.msrb.mxu2 %v918_v63  ;;  %v951_v26 = vld [vmem:[%s3350_s5 + $0x508] sm:$0xff] }
 0x133   :  { %v769_v54 = vsel %vm768_vm0, %v2662_v41, -inf  ;;  %1059 = vmatpush.msrb.mxu0 %v798_v28  ;;  %v1011_v39 = vld [vmem:[%s3350_s5 + $0x6e8] sm:$0xff] }
 0x134   :  { %1079 = vmatpush.msrb.mxu1 %v862_v47  ;;  %v815_v40 = vld [vmem:[%s3350_s5 + $0xc8] sm:$0xff] }
 0x135   :  { %1060 = vmatpush.msrb.mxu0 %v794_v52  ;;  %v875_v28 = vld [vmem:[%s3350_s5 + $0x2a8] sm:$0xff] }
 0x136   :  { %v939_v47 = vld [vmem:[%s3350_s5 + $0x4a8] sm:$0xff] }
 0x137   :  { %1061 = vmatpush.msrb.mxu0 %v790_v61  ;;  %v935_v52 = vld [vmem:[%s3350_s5 + $0x488] sm:$0xff] }
 0x138   :  { %v585_v45 = vpop.f32.mrf.mxu2  ;;  %v2562_v53 = vpop.f32.mrf.mxu3  ;;  %v995_v57 = vld [vmem:[%s3350_s5 + $0x668] sm:$0xff] }
 0x139   :  { %v586_v21 = vadd.f32 %v585_v45, %v566_v15  ;;  %v994_v45 = vld [vmem:[%s3350_s5 + $0x660] sm:$0xff]  ;;  %1126 = vmatpush.msra.mxu0 %v851_v2  ;;  %v1035_v15 = vld [vmem:[%s3350_s5 + $0x7a8] sm:$0xff] }
 0x13a   :  { %1118 = vmatpush.msrb.mxu3 %v994_v45  ;;  %v1007_v45 = vld [vmem:[%s3350_s5 + $0x6c8] sm:$0xff] }
 0x13b   :  { %v2647_v34 = vadd.f32 %v2562_v53, %v586_v21  ;;  %v858_v53 = vld [vmem:[%s3350_s5 + $0x220] sm:$0xff]  ;;  %1127 = vmatpush.msra.mxu0 %v847_v6  ;;  %v899_v21 = vld [vmem:[%s3350_s5 + $0x368] sm:$0xff] }
 0x13c   :  { %1119 = vmatpush.msrb.mxu3 %v990_v51  ;;  %1080 = vmatpush.msrb.mxu1 %v858_v53  ;;  %v871_v51 = vld [vmem:[%s3350_s5 + $0x288] sm:$0xff] }
 0x13d   :  { %v770_v48 = vsel %vm768_vm0, %v2647_v34, -inf  ;;  %1128 = vmatpush.msra.mxu0 %v843_v12  ;;  %v999_v53 = vld [vmem:[%s3350_s5 + $0x688] sm:$0xff] }
 0x13e   :  { %v773_v59 = vmax.f32 %v769_v54, %v770_v48  ;;  %1120 = vmatpush.msrb.mxu3 %v986_v58  ;;  %1081 = vmatpush.msrb.mxu1 %v854_v62  ;;  %v1003_v48 = vld [vmem:[%s3350_s5 + $0x6a8] sm:$0xff] }
 0x13f   :  { %1129 = vmatpush.msra.mxu0 %v839_v16  ;;  %v803_v54 = vld [vmem:[%s3350_s5 + $0x68] sm:$0xff] }
 0x140   :  { %1146 = vmatpush.msra.mxu1 %v915_v3  ;;  %v799_v58 = vld [vmem:[%s3350_s5 + $0x48] sm:$0xff] }
 0x141   :  { %1130 = vmatpush.msra.mxu0 %v835_v20  ;;  %v991_v61 = vld [vmem:[%s3350_s5 + $0x648] sm:$0xff]  ;;  %v848_v20 = vld [vmem:[%s3350_s5 + $0x1d0] sm:$0xff] }
 0x142   :  { %1147 = vmatpush.msra.mxu1 %v911_v7  ;;  %v795_v62 = vld [vmem:[%s3350_s5 + $0x28] sm:$0xff] }
 0x143   :  { %1131 = vmatpush.msra.mxu0 %v831_v9  ;;  %v859_v63 = vld [vmem:[%s3350_s5 + $0x228] sm:$0xff]  ;;  %v1040_v9 = vld [vmem:[%s3350_s5 + $0x7d0] sm:$0xff] }
 0x144   :  { %1148 = vmatpush.msra.mxu1 %v907_v13  ;;  %v791_v2 = vld [vmem:[%s3350_s5 + $0x8] sm:$0xff] }
 0x145   :  { %v625_v46 = vpop.f32.mrf.mxu0  ;;  %v645_v1 = vpop.f32.mrf.mxu1  ;;  %1132 = vmatpush.msra.mxu0 %v827_v30  ;;  %v855_v3 = vld [vmem:[%s3350_s5 + $0x208] sm:$0xff]  ;;  %v1036_v30 = vld [vmem:[%s3350_s5 + $0x7b0] sm:$0xff] }
 0x146   :  { %v626_v4 = vadd.f32 %v625_v46, %v442_v56  ;;  %1149 = vmatpush.msra.mxu1 %v903_v17  ;;  %v852_v17 = vld [vmem:[%s3350_s5 + $0x1f0] sm:$0xff] }
 0x148   :  { %v646_v24 = vadd.f32 %v645_v1, %v626_v4  ;;  %v982_v1 = vld [vmem:[%s3350_s5 + $0x600] sm:$0xff]  ;;  %v979_v4 = vld [vmem:[%s3350_s5 + $0x5e8] sm:$0xff]  ;;  %1150 = vmatpush.msra.mxu1 %v899_v21 }
 0x149   :  { %1121 = vmatpush.msrb.mxu3 %v982_v1  ;;  %1166 = vmatpush.msra.mxu2 %v979_v4  ;;  %v987_v1 = vld [vmem:[%s3350_s5 + $0x628] sm:$0xff] }
 0x14a   :  { %1151 = vmatpush.msra.mxu1 %v895_v25  ;;  %v919_v4 = vld [vmem:[%s3350_s5 + $0x408] sm:$0xff]  ;;  %v844_v25 = vld [vmem:[%s3350_s5 + $0x1b0] sm:$0xff] }
 0x152   :  { %v665_v10 = vpop.f32.mrf.mxu2  ;;  %v685_v18 = vpop.f32.mrf.mxu3 }
 0x153   :  { %v666_v22 = vadd.f32 %v665_v10, %v646_v24  ;;  %v975_v10 = vld [vmem:[%s3350_s5 + $0x5c8] sm:$0xff] }
 0x154   :  { %1167 = vmatpush.msra.mxu2 %v975_v10  ;;  %v963_v24 = vld [vmem:[%s3350_s5 + $0x568] sm:$0xff] }
 0x155   :  { %v2664_v42 = vadd.f32 %v685_v18, %v666_v22  ;;  %v967_v18 = vld [vmem:[%s3350_s5 + $0x588] sm:$0xff] }
 0x156   :  { %1168 = vmatpush.msra.mxu2 %v971_v14  ;;  %v891_v22 = vld [vmem:[%s3350_s5 + $0x328] sm:$0xff] }
 0x157   :  { %v771_v55 = vsel %vm768_vm0, %v2664_v42, -inf  ;;  %1152 = vmatpush.msra.mxu1 %v891_v22  ;;  %v840_v22 = vld [vmem:[%s3350_s5 + $0x190] sm:$0xff] }
 0x158   :  { %1169 = vmatpush.msra.mxu2 %v967_v18 }
 0x159   :  { %1153 = vmatpush.msra.mxu1 %v887_v33  ;;  %v836_v33 = vld [vmem:[%s3350_s5 + $0x170] sm:$0xff] }
 0x15a   :  { %1170 = vmatpush.msra.mxu2 %v963_v24  ;;  %v912_v24 = vld [vmem:[%s3350_s5 + $0x3d0] sm:$0xff] }
 0x15b   :  { %1154 = vmatpush.msra.mxu1 %v883_v37  ;;  %v832_v37 = vld [vmem:[%s3350_s5 + $0x150] sm:$0xff] }
 0x15c   :  { %1171 = vmatpush.msra.mxu2 %v959_v27  ;;  %v908_v27 = vld [vmem:[%s3350_s5 + $0x3b0] sm:$0xff] }
 0x15e   :  { %1172 = vmatpush.msra.mxu2 %v955_v23  ;;  %v904_v23 = vld [vmem:[%s3350_s5 + $0x390] sm:$0xff] }
 0x160   :  { %1173 = vmatpush.msra.mxu2 %v951_v26  ;;  %v900_v26 = vld [vmem:[%s3350_s5 + $0x370] sm:$0xff] }
 0x167   :  { %v705_v11 = vpop.f32.mrf.mxu0  ;;  %v725_v32 = vpop.f32.mrf.mxu1 }
 0x168   :  { %v706_v8 = vadd.f32 %v705_v11, %v443_v5  ;;  %v1043_v5 = vld [vmem:[%s3350_s5 + $0x7e8] sm:$0xff] }
 0x169   :  { %v1039_v11 = vld [vmem:[%s3350_s5 + $0x7c8] sm:$0xff]  ;;  %1186 = vmatpush.msra.mxu3 %v1043_v5 }
 0x16a   :  { %v726_v35 = vadd.f32 %v725_v32, %v706_v8  ;;  %v1027_v8 = vld [vmem:[%s3350_s5 + $0x768] sm:$0xff] }
 0x16b   :  { %1187 = vmatpush.msra.mxu3 %v1039_v11  ;;  %v823_v32 = vld [vmem:[%s3350_s5 + $0x108] sm:$0xff] }
 0x16c   :  { %1133 = vmatpush.msra.mxu0 %v823_v32  ;;  %v983_v5 = vld [vmem:[%s3350_s5 + $0x608] sm:$0xff]  ;;  %v1032_v32 = vld [vmem:[%s3350_s5 + $0x790] sm:$0xff] }
 0x16d   :  { %1188 = vmatpush.msra.mxu3 %v1035_v15 }
 0x16e   :  { %1134 = vmatpush.msra.mxu0 %v819_v36  ;;  %v1028_v36 = vld [vmem:[%s3350_s5 + $0x770] sm:$0xff] }
 0x16f   :  { %1189 = vmatpush.msra.mxu3 %v1031_v19  ;;  %v1044_v19 = vld [vmem:[%s3350_s5 + $0x7f0] sm:$0xff] }
 0x170   :  { %1135 = vmatpush.msra.mxu0 %v815_v40  ;;  %v1024_v40 = vld [vmem:[%s3350_s5 + $0x750] sm:$0xff] }
 0x171   :  { %1190 = vmatpush.msra.mxu3 %v1027_v8  ;;  %v976_v8 = vld [vmem:[%s3350_s5 + $0x5d0] sm:$0xff] }
 0x173   :  { %v745_v38 = vpop.f32.mrf.mxu2  ;;  %v765_v46 = vpop.f32.mrf.mxu3  ;;  %1191 = vmatpush.msra.mxu3 %v1023_v29  ;;  %v972_v29 = vld [vmem:[%s3350_s5 + $0x5b0] sm:$0xff] }
 0x174   :  { %v746_v43 = vadd.f32 %v745_v38, %v726_v35  ;;  %v1015_v35 = vld [vmem:[%s3350_s5 + $0x708] sm:$0xff] }
 0x175   :  { %1192 = vmatpush.msra.mxu3 %v1019_v31  ;;  %v947_v38 = vld [vmem:[%s3350_s5 + $0x4e8] sm:$0xff]  ;;  %v968_v31 = vld [vmem:[%s3350_s5 + $0x590] sm:$0xff] }
 0x176   :  { %v2680_v49 = vadd.f32 %v765_v46, %v746_v43  ;;  %v879_v43 = vld [vmem:[%s3350_s5 + $0x2c8] sm:$0xff]  ;;  %1174 = vmatpush.msra.mxu2 %v947_v38  ;;  %v896_v38 = vld [vmem:[%s3350_s5 + $0x350] sm:$0xff] }
 0x177   :  { %1193 = vmatpush.msra.mxu3 %v1015_v35  ;;  %1155 = vmatpush.msra.mxu1 %v879_v43  ;;  %v811_v46 = vld [vmem:[%s3350_s5 + $0xa8] sm:$0xff]  ;;  %v964_v35 = vld [vmem:[%s3350_s5 + $0x570] sm:$0xff] }
 0x178   :  { %v772_v56 = vsel %vm768_vm0, %v2680_v49, -inf  ;;  %1175 = vmatpush.msra.mxu2 %v943_v44  ;;  %1136 = vmatpush.msra.mxu0 %v811_v46  ;;  %v828_v43 = vld [vmem:[%s3350_s5 + $0x130] sm:$0xff] }
 0x179   :  { %v774_v60 = vmax.f32 %v771_v55, %v772_v56  ;;  %1194 = vmatpush.msra.mxu3 %v1011_v39  ;;  %1156 = vmatpush.msra.mxu1 %v875_v28  ;;  %v867_v55 = vld [vmem:[%s3350_s5 + $0x268] sm:$0xff]  ;;  %v960_v39 = vld [vmem:[%s3350_s5 + $0x550] sm:$0xff] }
 0x17a   :  { %1176 = vmatpush.msra.mxu2 %v939_v47  ;;  %1137 = vmatpush.msra.mxu0 %v807_v50  ;;  %v931_v56 = vld [vmem:[%s3350_s5 + $0x468] sm:$0xff]  ;;  %v892_v44 = vld [vmem:[%s3350_s5 + $0x330] sm:$0xff] }
 0x17b   :  { %v775_v0 = vmax.f32 %v773_v59, %v774_v60  ;;  %1195 = vmatpush.msra.mxu3 %v1007_v45  ;;  %1157 = vmatpush.msra.mxu1 %v871_v51  ;;  %v863_v59 = vld [vmem:[%s3350_s5 + $0x248] sm:$0xff]  ;;  %v956_v45 = vld [vmem:[%s3350_s5 + $0x530] sm:$0xff] }
 0x17c   :  { %1177 = vmatpush.msra.mxu2 %v935_v52  ;;  %1138 = vmatpush.msra.mxu0 %v803_v54  ;;  %v927_v60 = vld [vmem:[%s3350_s5 + $0x448] sm:$0xff]  ;;  %v1020_v46 = vld [vmem:[%s3350_s5 + $0x730] sm:$0xff] }
 0x17d   :  { %776 = vmax.xlane.f32.xlu0 %v775_v0  ;;  %1196 = vmatpush.msra.mxu3 %v1003_v48  ;;  %v923_v0 = vld [vmem:[%s3350_s5 + $0x428] sm:$0xff]  ;;  %v824_v28 = vld [vmem:[%s3350_s5 + $0x110] sm:$0xff] }
 0x17e   :  { %1158 = vmatpush.msra.mxu1 %v867_v55  ;;  %1178 = vmatpush.msra.mxu2 %v931_v56  ;;  %v888_v47 = vld [vmem:[%s3350_s5 + $0x310] sm:$0xff] }
 0x17f   :  { %1197 = vmatpush.msra.mxu3 %v999_v53  ;;  %1139 = vmatpush.msra.mxu0 %v799_v58  ;;  %v952_v48 = vld [vmem:[%s3350_s5 + $0x510] sm:$0xff] }
 0x180   :  { %1159 = vmatpush.msra.mxu1 %v863_v59  ;;  %1179 = vmatpush.msra.mxu2 %v927_v60  ;;  %v1016_v50 = vld [vmem:[%s3350_s5 + $0x710] sm:$0xff] }
 0x181   :  { %1198 = vmatpush.msra.mxu3 %v995_v57  ;;  %1140 = vmatpush.msra.mxu0 %v795_v62  ;;  %v820_v51 = vld [vmem:[%s3350_s5 + $0xf0] sm:$0xff] }
 0x182   :  { %1160 = vmatpush.msra.mxu1 %v859_v63  ;;  %1180 = vmatpush.msra.mxu2 %v923_v0  ;;  %v884_v52 = vld [vmem:[%s3350_s5 + $0x2f0] sm:$0xff] }
 0x183   :  { %1199 = vmatpush.msra.mxu3 %v991_v61  ;;  %1141 = vmatpush.msra.mxu0 %v791_v2  ;;  %v948_v53 = vld [vmem:[%s3350_s5 + $0x4f0] sm:$0xff] }
 0x184   :  { %1161 = vmatpush.msra.mxu1 %v855_v3  ;;  %1181 = vmatpush.msra.mxu2 %v919_v4  ;;  %v1012_v54 = vld [vmem:[%s3350_s5 + $0x6f0] sm:$0xff] }
 0x185   :  { %1200 = vmatpush.msra.mxu3 %v987_v1  ;;  %v816_v55 = vld [vmem:[%s3350_s5 + $0xd0] sm:$0xff] }
 0x186   :  { %v880_v56 = vld [vmem:[%s3350_s5 + $0x2d0] sm:$0xff] }
 0x187   :  { %1201 = vmatpush.msra.mxu3 %v983_v5  ;;  %v944_v57 = vld [vmem:[%s3350_s5 + $0x4d0] sm:$0xff] }
 0x188   :  { %v1008_v58 = vld [vmem:[%s3350_s5 + $0x6d0] sm:$0xff] }
 0x189   :  { %v812_v59 = vld [vmem:[%s3350_s5 + $0xb0] sm:$0xff] }
 0x18a   :  { %v876_v60 = vld [vmem:[%s3350_s5 + $0x2b0] sm:$0xff] }
 0x18b   :  { %v940_v61 = vld [vmem:[%s3350_s5 + $0x4b0] sm:$0xff] }
 0x18c   :  { %v1004_v62 = vld [vmem:[%s3350_s5 + $0x6b0] sm:$0xff] }
 0x18d   :  { %v808_v63 = vld [vmem:[%s3350_s5 + $0x90] sm:$0xff] }
 0x18e   :  { %v872_v0 = vld [vmem:[%s3350_s5 + $0x290] sm:$0xff] }
 0x18f   :  { %v936_v1 = vld [vmem:[%s3350_s5 + $0x490] sm:$0xff] }
 0x190   :  { %v1000_v2 = vld [vmem:[%s3350_s5 + $0x690] sm:$0xff] }
 0x191   :  { %v804_v3 = vld [vmem:[%s3350_s5 + $0x70] sm:$0xff] }
 0x192   :  { %v868_v4 = vld [vmem:[%s3350_s5 + $0x270] sm:$0xff] }
 0x193   :  { %v932_v5 = vld [vmem:[%s3350_s5 + $0x470] sm:$0xff] }
 0x1f0   :  { %v777_v6 = vpop.xlane.xlu0 %776 }
 0x1f1   :  { %v778_v7 = vsub.f32 %v2662_v41, %v777_v6  ;;  %v779_v10 = vsub.f32 %v2647_v34, %v777_v6  ;;  %v780_v11 = vsub.f32 %v2664_v42, %v777_v6  ;;  %v781_v12 = vsub.f32 %v2680_v49, %v777_v6  ;;  %v916_v34 = vld [vmem:[%s3350_s5 + $0x3f0] sm:$0xff] }
 0x1f2   :  { %v980_v42 = vld [vmem:[%s3350_s5 + $0x5f0] sm:$0xff] }
 0x1f3   :  { %v782_v13 = vmul.f32 1.442695, %v778_v7  ;;  %v784_v14 = vmul.f32 1.442695, %v779_v10  ;;  %v786_v15 = vmul.f32 1.442695, %v780_v11 }
 0x1f4   :  { %v788_v16 = vmul.f32 1.442695, %v781_v12  ;;  %v996_v6 = vld [vmem:[%s3350_s5 + $0x670] sm:$0xff] }
 0x1f5   :  { %1448 = vpow2.f32 %v782_v13  ;;  %v800_v7 = vld [vmem:[%s3350_s5 + $0x50] sm:$0xff] }
 0x1f6   :  { %1450 = vpow2.f32 %v784_v14  ;;  %v864_v10 = vld [vmem:[%s3350_s5 + $0x250] sm:$0xff] }
 0x1f7   :  { %1452 = vpow2.f32 %v786_v15  ;;  %v928_v11 = vld [vmem:[%s3350_s5 + $0x450] sm:$0xff] }
 0x1f8   :  { %1454 = vpow2.f32 %v788_v16  ;;  %v992_v12 = vld [vmem:[%s3350_s5 + $0x650] sm:$0xff] }
 0x1f9   :  { %v796_v13 = vld [vmem:[%s3350_s5 + $0x30] sm:$0xff] }
 0x1fa   :  { %v860_v14 = vld [vmem:[%s3350_s5 + $0x230] sm:$0xff] }
 0x1fb   :  { %v2917_v18 = vpop.eup %1448  ;;  %v924_v15 = vld [vmem:[%s3350_s5 + $0x430] sm:$0xff] }
 0x1fc   :  { %v2922_v41 = vpop.eup %1450  ;;  %1062 = vmatmul.f32.vlgmr.msrb.gmra.mxu0 %v2917_v18  ;;  %v988_v16 = vld [vmem:[%s3350_s5 + $0x630] sm:$0xff] }
 0x1fd   :  { %v2928_v49 = vpop.eup %1452  ;;  %1082 = vmatmul.f32.vlgmr.msrb.gmra.mxu1 %v2922_v41  ;;  %1206 = vmatpush.msrb.mxu0 %v852_v17  ;;  %v792_v17 = vld [vmem:[%s3350_s5 + $0x10] sm:$0xff] }
 0x1fe   :  { %v2937_v21 = vpop.eup %1454  ;;  %1102 = vmatmul.f32.vlgmr.msrb.gmra.mxu2 %v2928_v49  ;;  %1226 = vmatpush.msrb.mxu1 %v916_v34  ;;  %v856_v34 = vld [vmem:[%s3350_s5 + $0x210] sm:$0xff] }
 0x1ff   :  { %1122 = vmatmul.f32.vlgmr.msrb.gmra.mxu3 %v2937_v21  ;;  %1246 = vmatpush.msrb.mxu2 %v980_v42  ;;  %v920_v42 = vld [vmem:[%s3350_s5 + $0x410] sm:$0xff] }
 0x200   :  { %1266 = vmatpush.msrb.mxu3 %v1044_v19  ;;  %1207 = vmatpush.msrb.mxu0 %v848_v20  ;;  %v984_v19 = vld [vmem:[%s3350_s5 + $0x610] sm:$0xff]  ;;  %v853_v20 = vld [vmem:[%s3350_s5 + $0x1f8] sm:$0xff] }
 0x201   :  { %1227 = vmatpush.msrb.mxu1 %v912_v24  ;;  %1247 = vmatpush.msrb.mxu2 %v976_v8  ;;  %v917_v24 = vld [vmem:[%s3350_s5 + $0x3f8] sm:$0xff] }
 0x202   :  { %1267 = vmatpush.msrb.mxu3 %v1040_v9  ;;  %1208 = vmatpush.msrb.mxu0 %v844_v25  ;;  %v981_v8 = vld [vmem:[%s3350_s5 + $0x5f8] sm:$0xff] }
 0x203   :  { %1228 = vmatpush.msrb.mxu1 %v908_v27  ;;  %1248 = vmatpush.msrb.mxu2 %v972_v29  ;;  %v1045_v9 = vld [vmem:[%s3350_s5 + $0x7f8] sm:$0xff] }
 0x204   :  { %1268 = vmatpush.msrb.mxu3 %v1036_v30  ;;  %1209 = vmatpush.msrb.mxu0 %v840_v22  ;;  %v849_v25 = vld [vmem:[%s3350_s5 + $0x1d8] sm:$0xff] }
 0x205   :  { %1229 = vmatpush.msrb.mxu1 %v904_v23  ;;  %1249 = vmatpush.msrb.mxu2 %v968_v31  ;;  %v913_v27 = vld [vmem:[%s3350_s5 + $0x3d8] sm:$0xff] }
 0x206   :  { %1269 = vmatpush.msrb.mxu3 %v1032_v32  ;;  %1142 = vmatmul.f32.vlgmr.msra.gmra.mxu0 %v2917_v18  ;;  %v977_v29 = vld [vmem:[%s3350_s5 + $0x5d8] sm:$0xff] }
 0x207   :  { %1162 = vmatmul.f32.vlgmr.msra.gmra.mxu1 %v2922_v41  ;;  %1182 = vmatmul.f32.vlgmr.msra.gmra.mxu2 %v2928_v49  ;;  %v1041_v30 = vld [vmem:[%s3350_s5 + $0x7d8] sm:$0xff] }
 0x208   :  { %1202 = vmatmul.f32.vlgmr.msra.gmra.mxu3 %v2937_v21  ;;  %1210 = vmatpush.msrb.mxu0 %v836_v33  ;;  %v845_v22 = vld [vmem:[%s3350_s5 + $0x1b8] sm:$0xff] }
 0x209   :  { %1230 = vmatpush.msrb.mxu1 %v900_v26  ;;  %1250 = vmatpush.msrb.mxu2 %v964_v35  ;;  %v909_v23 = vld [vmem:[%s3350_s5 + $0x3b8] sm:$0xff] }
 0x20a   :  { %1270 = vmatpush.msrb.mxu3 %v1028_v36  ;;  %1211 = vmatpush.msrb.mxu0 %v832_v37  ;;  %v973_v31 = vld [vmem:[%s3350_s5 + $0x5b8] sm:$0xff] }
 0x20b   :  { %1231 = vmatpush.msrb.mxu1 %v896_v38  ;;  %1251 = vmatpush.msrb.mxu2 %v960_v39  ;;  %v1037_v32 = vld [vmem:[%s3350_s5 + $0x7b8] sm:$0xff] }
 0x20c   :  { %1271 = vmatpush.msrb.mxu3 %v1024_v40  ;;  %1212 = vmatpush.msrb.mxu0 %v828_v43  ;;  %v841_v33 = vld [vmem:[%s3350_s5 + $0x198] sm:$0xff] }
 0x20d   :  { %1232 = vmatpush.msrb.mxu1 %v892_v44  ;;  %1252 = vmatpush.msrb.mxu2 %v956_v45  ;;  %v905_v26 = vld [vmem:[%s3350_s5 + $0x398] sm:$0xff] }
 0x20e   :  { %1272 = vmatpush.msrb.mxu3 %v1020_v46  ;;  %1213 = vmatpush.msrb.mxu0 %v824_v28  ;;  %v969_v35 = vld [vmem:[%s3350_s5 + $0x598] sm:$0xff] }
 0x20f   :  { %1233 = vmatpush.msrb.mxu1 %v888_v47  ;;  %1253 = vmatpush.msrb.mxu2 %v952_v48  ;;  %v1033_v36 = vld [vmem:[%s3350_s5 + $0x798] sm:$0xff] }
 0x210   :  { %1273 = vmatpush.msrb.mxu3 %v1016_v50  ;;  %1214 = vmatpush.msrb.mxu0 %v820_v51  ;;  %v837_v37 = vld [vmem:[%s3350_s5 + $0x178] sm:$0xff] }
 0x211   :  { %1234 = vmatpush.msrb.mxu1 %v884_v52  ;;  %1254 = vmatpush.msrb.mxu2 %v948_v53  ;;  %v901_v38 = vld [vmem:[%s3350_s5 + $0x378] sm:$0xff] }
 0x212   :  { %1274 = vmatpush.msrb.mxu3 %v1012_v54  ;;  %1215 = vmatpush.msrb.mxu0 %v816_v55  ;;  %v965_v39 = vld [vmem:[%s3350_s5 + $0x578] sm:$0xff] }
 0x213   :  { %1235 = vmatpush.msrb.mxu1 %v880_v56  ;;  %1255 = vmatpush.msrb.mxu2 %v944_v57  ;;  %v1029_v40 = vld [vmem:[%s3350_s5 + $0x778] sm:$0xff] }
 0x214   :  { %1275 = vmatpush.msrb.mxu3 %v1008_v58  ;;  %1216 = vmatpush.msrb.mxu0 %v812_v59  ;;  %v833_v43 = vld [vmem:[%s3350_s5 + $0x158] sm:$0xff] }
 0x215   :  { %1236 = vmatpush.msrb.mxu1 %v876_v60  ;;  %1256 = vmatpush.msrb.mxu2 %v940_v61  ;;  %v897_v44 = vld [vmem:[%s3350_s5 + $0x358] sm:$0xff] }
 0x216   :  { %1276 = vmatpush.msrb.mxu3 %v1004_v62  ;;  %1217 = vmatpush.msrb.mxu0 %v808_v63  ;;  %v961_v45 = vld [vmem:[%s3350_s5 + $0x558] sm:$0xff] }
 0x217   :  { %1237 = vmatpush.msrb.mxu1 %v872_v0  ;;  %1257 = vmatpush.msrb.mxu2 %v936_v1  ;;  %v1025_v46 = vld [vmem:[%s3350_s5 + $0x758] sm:$0xff] }
 0x218   :  { %1277 = vmatpush.msrb.mxu3 %v1000_v2  ;;  %1218 = vmatpush.msrb.mxu0 %v804_v3  ;;  %v829_v28 = vld [vmem:[%s3350_s5 + $0x138] sm:$0xff] }
 0x219   :  { %1238 = vmatpush.msrb.mxu1 %v868_v4  ;;  %1258 = vmatpush.msrb.mxu2 %v932_v5  ;;  %v893_v47 = vld [vmem:[%s3350_s5 + $0x338] sm:$0xff] }
 0x21a   :  { %1278 = vmatpush.msrb.mxu3 %v996_v6  ;;  %1219 = vmatpush.msrb.mxu0 %v800_v7  ;;  %v957_v48 = vld [vmem:[%s3350_s5 + $0x538] sm:$0xff] }
 0x21b   :  { %1239 = vmatpush.msrb.mxu1 %v864_v10  ;;  %1259 = vmatpush.msrb.mxu2 %v928_v11  ;;  %v1021_v50 = vld [vmem:[%s3350_s5 + $0x738] sm:$0xff] }
 0x21c   :  { %1279 = vmatpush.msrb.mxu3 %v992_v12  ;;  %1220 = vmatpush.msrb.mxu0 %v796_v13  ;;  %v825_v51 = vld [vmem:[%s3350_s5 + $0x118] sm:$0xff] }
 0x21d   :  { %1240 = vmatpush.msrb.mxu1 %v860_v14  ;;  %1260 = vmatpush.msrb.mxu2 %v924_v15  ;;  %v889_v52 = vld [vmem:[%s3350_s5 + $0x318] sm:$0xff] }
 0x21e   :  { %1280 = vmatpush.msrb.mxu3 %v988_v16  ;;  %1221 = vmatpush.msrb.mxu0 %v792_v17  ;;  %v953_v53 = vld [vmem:[%s3350_s5 + $0x518] sm:$0xff] }
 0x21f   :  { %1241 = vmatpush.msrb.mxu1 %v856_v34  ;;  %1261 = vmatpush.msrb.mxu2 %v920_v42  ;;  %v1017_v54 = vld [vmem:[%s3350_s5 + $0x718] sm:$0xff] }
 0x220   :  { %1281 = vmatpush.msrb.mxu3 %v984_v19  ;;  %1222 = vmatmul.f32.vlgmr.msrb.gmra.mxu0 %v2917_v18  ;;  %v821_v55 = vld [vmem:[%s3350_s5 + $0xf8] sm:$0xff] }
 0x221   :  { %1242 = vmatmul.f32.vlgmr.msrb.gmra.mxu1 %v2922_v41  ;;  %1262 = vmatmul.f32.vlgmr.msrb.gmra.mxu2 %v2928_v49  ;;  %v885_v56 = vld [vmem:[%s3350_s5 + $0x2f8] sm:$0xff] }
 0x222   :  { %1282 = vmatmul.f32.vlgmr.msrb.gmra.mxu3 %v2937_v21  ;;  %1286 = vmatpush.msra.mxu0 %v853_v20  ;;  %v949_v57 = vld [vmem:[%s3350_s5 + $0x4f8] sm:$0xff] }
 0x223   :  { %1306 = vmatpush.msra.mxu1 %v917_v24  ;;  %1326 = vmatpush.msra.mxu2 %v981_v8  ;;  %v1013_v58 = vld [vmem:[%s3350_s5 + $0x6f8] sm:$0xff] }
 0x224   :  { %1346 = vmatpush.msra.mxu3 %v1045_v9  ;;  %1287 = vmatpush.msra.mxu0 %v849_v25  ;;  %v817_v59 = vld [vmem:[%s3350_s5 + $0xd8] sm:$0xff] }
 0x225   :  { %1307 = vmatpush.msra.mxu1 %v913_v27  ;;  %1327 = vmatpush.msra.mxu2 %v977_v29  ;;  %v881_v60 = vld [vmem:[%s3350_s5 + $0x2d8] sm:$0xff] }
 0x226   :  { %1347 = vmatpush.msra.mxu3 %v1041_v30  ;;  %1288 = vmatpush.msra.mxu0 %v845_v22  ;;  %v945_v61 = vld [vmem:[%s3350_s5 + $0x4d8] sm:$0xff] }
 0x227   :  { %1308 = vmatpush.msra.mxu1 %v909_v23  ;;  %1328 = vmatpush.msra.mxu2 %v973_v31  ;;  %v1009_v62 = vld [vmem:[%s3350_s5 + $0x6d8] sm:$0xff] }
 0x228   :  { %1348 = vmatpush.msra.mxu3 %v1037_v32  ;;  %1289 = vmatpush.msra.mxu0 %v841_v33  ;;  %v813_v63 = vld [vmem:[%s3350_s5 + $0xb8] sm:$0xff] }
 0x229   :  { %1309 = vmatpush.msra.mxu1 %v905_v26  ;;  %1329 = vmatpush.msra.mxu2 %v969_v35  ;;  %v877_v0 = vld [vmem:[%s3350_s5 + $0x2b8] sm:$0xff] }
 0x22a   :  { %1349 = vmatpush.msra.mxu3 %v1033_v36  ;;  %1290 = vmatpush.msra.mxu0 %v837_v37  ;;  %v941_v1 = vld [vmem:[%s3350_s5 + $0x4b8] sm:$0xff] }
 0x22b   :  { %1310 = vmatpush.msra.mxu1 %v901_v38  ;;  %1330 = vmatpush.msra.mxu2 %v965_v39  ;;  %v1005_v2 = vld [vmem:[%s3350_s5 + $0x6b8] sm:$0xff] }
 0x22c   :  { %1350 = vmatpush.msra.mxu3 %v1029_v40  ;;  %1291 = vmatpush.msra.mxu0 %v833_v43  ;;  %v809_v3 = vld [vmem:[%s3350_s5 + $0x98] sm:$0xff] }
 0x22d   :  { %1311 = vmatpush.msra.mxu1 %v897_v44  ;;  %1331 = vmatpush.msra.mxu2 %v961_v45  ;;  %v873_v4 = vld [vmem:[%s3350_s5 + $0x298] sm:$0xff] }
 0x22e   :  { %1351 = vmatpush.msra.mxu3 %v1025_v46  ;;  %1292 = vmatpush.msra.mxu0 %v829_v28  ;;  %v937_v5 = vld [vmem:[%s3350_s5 + $0x498] sm:$0xff] }
 0x22f   :  { %1312 = vmatpush.msra.mxu1 %v893_v47  ;;  %1332 = vmatpush.msra.mxu2 %v957_v48  ;;  %v1001_v6 = vld [vmem:[%s3350_s5 + $0x698] sm:$0xff] }
 0x230   :  { %1352 = vmatpush.msra.mxu3 %v1021_v50  ;;  %1293 = vmatpush.msra.mxu0 %v825_v51  ;;  %v805_v7 = vld [vmem:[%s3350_s5 + $0x78] sm:$0xff] }
 0x231   :  { %1313 = vmatpush.msra.mxu1 %v889_v52  ;;  %1333 = vmatpush.msra.mxu2 %v953_v53  ;;  %v869_v10 = vld [vmem:[%s3350_s5 + $0x278] sm:$0xff] }
 0x232   :  { %1353 = vmatpush.msra.mxu3 %v1017_v54  ;;  %1294 = vmatpush.msra.mxu0 %v821_v55  ;;  %v933_v11 = vld [vmem:[%s3350_s5 + $0x478] sm:$0xff] }
 0x233   :  { %1314 = vmatpush.msra.mxu1 %v885_v56  ;;  %1334 = vmatpush.msra.mxu2 %v949_v57  ;;  %v997_v12 = vld [vmem:[%s3350_s5 + $0x678] sm:$0xff] }
 0x234   :  { %1354 = vmatpush.msra.mxu3 %v1013_v58  ;;  %1295 = vmatpush.msra.mxu0 %v817_v59  ;;  %v801_v13 = vld [vmem:[%s3350_s5 + $0x58] sm:$0xff] }
 0x235   :  { %1315 = vmatpush.msra.mxu1 %v881_v60  ;;  %1335 = vmatpush.msra.mxu2 %v945_v61  ;;  %v865_v14 = vld [vmem:[%s3350_s5 + $0x258] sm:$0xff] }
 0x236   :  { %1355 = vmatpush.msra.mxu3 %v1009_v62  ;;  %1296 = vmatpush.msra.mxu0 %v813_v63  ;;  %v929_v15 = vld [vmem:[%s3350_s5 + $0x458] sm:$0xff] }
 0x237   :  { %1316 = vmatpush.msra.mxu1 %v877_v0  ;;  %1336 = vmatpush.msra.mxu2 %v941_v1  ;;  %v993_v16 = vld [vmem:[%s3350_s5 + $0x658] sm:$0xff] }
 0x238   :  { %1356 = vmatpush.msra.mxu3 %v1005_v2  ;;  %1297 = vmatpush.msra.mxu0 %v809_v3  ;;  %v797_v17 = vld [vmem:[%s3350_s5 + $0x38] sm:$0xff] }
 0x239   :  { %1317 = vmatpush.msra.mxu1 %v873_v4  ;;  %1337 = vmatpush.msra.mxu2 %v937_v5  ;;  %v861_v34 = vld [vmem:[%s3350_s5 + $0x238] sm:$0xff] }
 0x23a   :  { %1357 = vmatpush.msra.mxu3 %v1001_v6  ;;  %1298 = vmatpush.msra.mxu0 %v805_v7  ;;  %v925_v42 = vld [vmem:[%s3350_s5 + $0x438] sm:$0xff] }
 0x23b   :  { %1318 = vmatpush.msra.mxu1 %v869_v10  ;;  %1338 = vmatpush.msra.mxu2 %v933_v11  ;;  %v989_v19 = vld [vmem:[%s3350_s5 + $0x638] sm:$0xff] }
 0x23c   :  { %1358 = vmatpush.msra.mxu3 %v997_v12  ;;  %1299 = vmatpush.msra.mxu0 %v801_v13  ;;  %v793_v20 = vld [vmem:[%s3350_s5 + $0x18] sm:$0xff] }
 0x23d   :  { %1319 = vmatpush.msra.mxu1 %v865_v14  ;;  %1339 = vmatpush.msra.mxu2 %v929_v15  ;;  %v857_v24 = vld [vmem:[%s3350_s5 + $0x218] sm:$0xff] }
 0x23e   :  { %1359 = vmatpush.msra.mxu3 %v993_v16  ;;  %1300 = vmatpush.msra.mxu0 %v797_v17  ;;  %v921_v8 = vld [vmem:[%s3350_s5 + $0x418] sm:$0xff] }
 0x23f   :  { %1320 = vmatpush.msra.mxu1 %v861_v34  ;;  %1340 = vmatpush.msra.mxu2 %v925_v42  ;;  %v985_v9 = vld [vmem:[%s3350_s5 + $0x618] sm:$0xff] }
 0x240   :  { %1360 = vmatpush.msra.mxu3 %v989_v19  ;;  %1301 = vmatpush.msra.mxu0 %v793_v20 }
 0x241   :  { %1321 = vmatpush.msra.mxu1 %v857_v24  ;;  %1341 = vmatpush.msra.mxu2 %v921_v8 }
 0x242   :  { %1361 = vmatpush.msra.mxu3 %v985_v9  ;;  %1302 = vmatmul.f32.vlgmr.msra.gmra.mxu0 %v2917_v18 }
 0x243   :  { %1322 = vmatmul.f32.vlgmr.msra.gmra.mxu1 %v2922_v41  ;;  %1342 = vmatmul.f32.vlgmr.msra.gmra.mxu2 %v2928_v49 }
 0x244   :  { %1362 = vmatmul.f32.vlgmr.msra.gmra.mxu3 %v2937_v21 }
 0x279   :  { %v1063_v25 = vpop.f32.mrf.mxu0 }
 0x27a   :  { %v1083_v27 = vpop.f32.mrf.mxu1 }
 0x27b   :  { %v1084_v40 = vadd.f32 %v1083_v27, %v1063_v25 }
 0x281   :  { %v1103_v29 = vpop.f32.mrf.mxu2 }
 0x282   :  { %v1123_v30 = vpop.f32.mrf.mxu3  ;;  %v1104_v45 = vadd.f32 %v1103_v29, %v1084_v40 }
 0x283   :  { %v1143_v22 = vpop.f32.mrf.mxu0 }
 0x284   :  { %v1163_v23 = vpop.f32.mrf.mxu1  ;;  %v3322_v28 = vadd.f32 %v1123_v30, %v1104_v45 }
 0x285   :  { %v1164_v35 = vadd.f32 %v1163_v23, %v1143_v22 }
 0x286   :  { %vm1371_vm6 = vweird.f32 %v3322_v28  ;;  %v1375_v15 = vand.u32 2147483647, %v3322_v28  ;;  %v1377_v19 = vand.u32 2147483648, %v3322_v28 }
 0x288   :  { %v1378_v23 = vor.u32 1.1754944e-38, %v1377_v19  ;;  %vm1376_vm15 = vcmp.eq.f32.partialorder %v1375_v15, 8.507059e+37 }
 0x28a   :  { %v1183_v31 = vpop.f32.mrf.mxu2 }
 0x28b   :  { %v1203_v32 = vpop.f32.mrf.mxu3  ;;  %v1184_v37 = vadd.f32 %v1183_v31, %v1164_v35 }
 0x28d   :  { %v1204_v43 = vadd.f32 %v1203_v32, %v1184_v37 }
 0x28f   :  { %1456 = vrcp.f32 %v1204_v43  ;;  %vm1386_vm2 = vweird.f32 %v1204_v43  ;;  %v1392_v3 = vand.u32 2147483648, %v1204_v43  ;;  %v1390_v5 = vand.u32 2147483647, %v1204_v43 }
 0x291   :  { %v1393_v16 = vor.u32 1.1754944e-38, %v1392_v3  ;;  %vm1391_vm9 = vcmp.eq.f32.partialorder %v1390_v5, 8.507059e+37 }
 0x295   :  { %v1457_v47 = vpop.eup %1456 }
 0x296   :  { %v1382_v50 = vmul.f32 %v1457_v47, %v1204_v43  ;;  %vm1387_vm1 = vweird.f32 %v1457_v47 }
 0x297   :  { %vm3326_vm4 = vmor %vm1386_vm2, %vm1387_vm1  ;;  %vm1434_vm2 = vcmask 1042434  }
 0x298   :  { %v1383_v56 = vsub.f32 1.0, %v1382_v50 }
 0x29a   :  { %v1384_v63 = vmul.f32 %v1457_v47, %v1383_v56 }
 0x29c   :  { %v1385_v2 = vadd.f32 %v1457_v47, %v1384_v63 }
 0x29d   :  { %v1223_v33 = vpop.f32.mrf.mxu0 }
 0x29e   :  { %v1243_v26 = vpop.f32.mrf.mxu1  ;;  %v1389_v12 = vsel %vm3326_vm4, %v1457_v47, %v1385_v2 }
 0x29f   :  { %v1244_v38 = vadd.f32 %v1243_v26, %v1223_v33  ;;  %v1394_v20 = vsel %vm1391_vm9, %v1393_v16, %v1389_v12 }
 0x2a0   :  { %v1395_v30 = vmul.f32 %v2922_v41, %v1394_v20 }
 0x2a2   :  { %v1430_v37 = vrot.slane %v1395_v30, 7 }
 0x2a4   :  { %v1263_v36 = vpop.f32.mrf.mxu2 }
 0x2a5   :  { %v1264_v39 = vadd.f32 %v1263_v36, %v1244_v38  ;;  %v1283_v44 = vpop.f32.mrf.mxu3  ;;  %v1439_v36 = vlaneseq }
 0x2a7   :  { %v1284_v46 = vadd.f32 %v1283_v44, %v1264_v39  ;;  %vm1441_vm4 = vcmp.lt.s32.totalorder %v1439_v36, 512 }
 0x2a9   :  { %1458 = vrcp.f32 %v1284_v46  ;;  %v1407_v11 = vand.u32 2147483648, %v1284_v46  ;;  %vm1401_vm5 = vweird.f32 %v1284_v46  ;;  %v1405_v13 = vand.u32 2147483647, %v1284_v46 }
 0x2aa   :  { %1460 = vrcp.f32 %v3322_v28 }
 0x2ab   :  { %v1408_v24 = vor.u32 1.1754944e-38, %v1407_v11  ;;  %vm1406_vm10 = vcmp.eq.f32.partialorder %v1405_v13, 8.507059e+37 }
 0x2af   :  { %v1459_v48 = vpop.eup %1458 }
 0x2b0   :  { %v1397_v53 = vmul.f32 %v1459_v48, %v1284_v46  ;;  %v1461_v54 = vpop.eup %1460  ;;  %vm1402_vm3 = vweird.f32 %v1459_v48 }
 0x2b1   :  { %v1367_v59 = vmul.f32 %v1461_v54, %v3322_v28  ;;  %vm1372_vm7 = vweird.f32 %v1461_v54  ;;  %vm1403_vm8 = vmor %vm1401_vm5, %vm1402_vm3  ;;  %vm1436_vm3 = vcmask 1041408  }
 0x2b2   :  { %v1398_v60 = vsub.f32 1.0, %v1397_v53  ;;  %vm1373_vm12 = vmor %vm1371_vm6, %vm1372_vm7 }
 0x2b3   :  { %v1368_v0 = vsub.f32 1.0, %v1367_v59 }
 0x2b4   :  { %v1399_v1 = vmul.f32 %v1459_v48, %v1398_v60 }
 0x2b5   :  { %v1369_v4 = vmul.f32 %v1461_v54, %v1368_v0 }
 0x2b6   :  { %v1400_v6 = vadd.f32 %v1459_v48, %v1399_v1 }
 0x2b7   :  { %v1370_v17 = vadd.f32 %v1461_v54, %v1369_v4 }
 0x2b8   :  { %v1404_v34 = vsel %vm1403_vm8, %v1459_v48, %v1400_v6 }
 0x2b9   :  { %v1409_v27 = vsel %vm1406_vm10, %v1408_v24, %v1404_v34  ;;  %v1374_v29 = vsel %vm1373_vm12, %v1461_v54, %v1370_v17 }
 0x2ba   :  { %v1410_v32 = vmul.f32 %v2928_v49, %v1409_v27  ;;  %v1379_v26 = vsel %vm1376_vm15, %v1378_v23, %v1374_v29 }
 0x2bb   :  { %v1380_v39 = vmul.f32 %v2917_v18, %v1379_v26 }
 0x2bc   :  { %v1431_v41 = vrot.slane %v1410_v32, 6 }
 0x2bd   :  { %v1433_v43 = vsel %vm768_vm0, %v1380_v39, %v1430_v37 }
 0x2bf   :  { %v1303_v51 = vpop.f32.mrf.mxu0 }
 0x2c0   :  { %v1323_v52 = vpop.f32.mrf.mxu1 }
 0x2c1   :  { %v1324_v55 = vadd.f32 %v1323_v52, %v1303_v51 }
 0x2c6   :  { %v1343_v57 = vpop.f32.mrf.mxu2 }
 0x2c7   :  { %v1344_v58 = vadd.f32 %v1343_v57, %v1324_v55  ;;  %v1363_v61 = vpop.f32.mrf.mxu3 }
 0x2c9   :  { %v1364_v62 = vadd.f32 %v1363_v61, %v1344_v58 }
 0x2cb   :  { %1462 = vrcp.f32 %v1364_v62  ;;  %v1422_v8 = vand.u32 2147483648, %v1364_v62  ;;  %v1420_v25 = vand.u32 2147483647, %v1364_v62  ;;  %vm1416_vm13 = vweird.f32 %v1364_v62 }
 0x2cd   :  { %v1423_v31 = vor.u32 1.1754944e-38, %v1422_v8  ;;  %vm1421_vm1 = vcmp.eq.f32.partialorder %v1420_v25, 8.507059e+37 }
 0x2d1   :  { %v1463_v7 = vpop.eup %1462 }
 0x2d2   :  { %v1412_v14 = vmul.f32 %v1463_v7, %v1364_v62  ;;  %vm1417_vm11 = vweird.f32 %v1463_v7 }
 0x2d3   :  { %vm1418_vm14 = vmor %vm1416_vm13, %vm1417_vm11 }
 0x2d4   :  { %v1413_v42 = vsub.f32 1.0, %v1412_v14 }
 0x2d6   :  { %v1414_v9 = vmul.f32 %v1463_v7, %v1413_v42 }
 0x2d8   :  { %v1415_v22 = vadd.f32 %v1463_v7, %v1414_v9 }
 0x2da   :  { %v1419_v33 = vsel %vm1418_vm14, %v1463_v7, %v1415_v22 }
 0x2db   :  { %v1424_v35 = vsel %vm1421_vm1, %v1423_v31, %v1419_v33 }
 0x2dc   :  { %v1425_v38 = vmul.f32 %v2937_v21, %v1424_v35 }
 0x2de   :  { %v1432_v40 = vrot.slane %v1425_v38, 5 }
 0x2e0   :  { %v1435_v44 = vsel %vm1434_vm2, %v1431_v41, %v1432_v40 }
 0x2e1   :  { %v1437_v45 = vsel %vm1436_vm3, %v1433_v43, %v1435_v44 }
 0x2e2   :  { %1443 = vst.msk [vmem:[%s3352_s6] sm:$0xf] %vm1441_vm4, %v1437_v45 }

</bundles_post_ra>
